<compile_context>
chip_gen: v7x
topology: tpu7x:2x2x1
jax: 0.10.0
libtpu: 0.0.40
codegen_flags: <defaults>
</compile_context>

<pallas_src>
import jax
import jax.numpy as jnp
from jax.experimental import pallas as pl
from jax.experimental.pallas import tpu as pltpu

_VMEM_LIMIT = 32 * 1024 * 1024


def _silu(y):
    # y * sigmoid(y); the reciprocal runs on the EUP slot (approx vrcp).
    return y * pl.reciprocal(1.0 + jnp.exp(-y), approx=True)


# ---------------------------------------------------------------------------
# Fused kernel: one (1, TH, Wo, 2C) output tile per grid step.
#   xr_ref: (1, TH, 2, Wo, 2*C2)  x rows of the tile, row/col parity folded
#   xh_ref: (1, 1, Wo, 2*C2)      x row 2*t*TH - 1 (halo for the 3x3 conv)
#   w1: (C2, C) maxpool-branch 1x1;  w2: (C2, C) out3 1x1;  w3: (3,3,C,C) HWIO
#   s*/b*: folded BN scale/bias, shape (1, C)
# Lane layout of the parity-folded views: lanes [0:C2] = even cols,
# lanes [C2:2*C2] = odd cols;  xb[:, 0] = even rows, xb[:, 1] = odd rows.
# ---------------------------------------------------------------------------
def fused_mp_kernel(xr_ref, xh_ref,
                    w1_ref, s1_ref, b1_ref,
                    w2_ref, s2_ref, b2_ref,
                    w3_ref, s3_ref, b3_ref,
                    o_ref):
    TH = xr_ref.shape[1]
    Wo = xr_ref.shape[3]
    C2 = xr_ref.shape[4] // 2
    C = w2_ref.shape[1]
    M = TH * Wo
    t = pl.program_id(1)
    f32 = jnp.float32

    xb = xr_ref[0]                                   # (TH, 2, Wo, 2*C2) bf16
    x_er = xb[:, 0]                                  # even input rows (2i)
    x_or = xb[:, 1]                                  # odd  input rows (2i+1)

    # ---- branch 1: maxpool(2x2, s2) + 1x1 conv + BN + SiLU ----------------
    rmax = jnp.maximum(x_er, x_or)                   # max over row parity
    mpool = jnp.maximum(rmax[..., :C2], rmax[..., C2:])   # max over col parity
    y2 = jnp.dot(mpool.reshape(M, C2), w1_ref[...],
                 preferred_element_type=f32)
    y2 = _silu(y2 * s1_ref[...] + b1_ref[...])       # (M, C) f32

    # ---- out3 = SiLU(BN(1x1 conv(x))) computed in-register ----------------
    w2 = w2_ref[...]
    s2 = s2_ref[...]
    b2 = b2_ref[...]

    def conv2(v2d):                                  # (rows, C2) -> (rows, C) bf16
        y = jnp.dot(v2d, w2, preferred_element_type=f32)
        return _silu(y * s2 + b2).astype(jnp.bfloat16)

    e_e = conv2(x_er[..., :C2].reshape(M, C2))       # even rows, even cols
    e_o = conv2(x_er[..., C2:].reshape(M, C2))       # even rows, odd  cols
    o_e = conv2(x_or[..., :C2].reshape(M, C2))       # odd  rows, even cols
    o_o = conv2(x_or[..., C2:].reshape(M, C2))       # odd  rows, odd  cols

    # halo row (global x row 2*t*TH - 1, an odd row); zero at t==0 (top pad-1).
    # NOTE: the BlockSpec deliberately loads row 0 at t==0; keep this select.
    xh = xh_ref[0, 0]                                # (Wo, 2*C2)
    h_e = conv2(xh[:, :C2])
    h_o = conv2(xh[:, C2:])
    h_e = jnp.where(t == 0, jnp.zeros_like(h_e), h_e)
    h_o = jnp.where(t == 0, jnp.zeros_like(h_o), h_o)

    # rows 2i-1 slabs: previous odd row, halo at the top of the tile.
    # TODO(synk): a sublane roll + row-0 select would avoid this small copy.
    if TH > 1:
        om_e = jnp.concatenate(
            [h_e[None], o_e.reshape(TH, Wo, C)[:TH - 1]], axis=0).reshape(M, C)
        om_o = jnp.concatenate(
            [h_o[None], o_o.reshape(TH, Wo, C)[:TH - 1]], axis=0).reshape(M, C)
    else:
        om_e, om_o = h_e, h_o

    # ---- branch 2: 3x3, stride 2, pad 1 conv + BN + SiLU -------------------
    w3 = w3_ref[...]                                 # (3, 3, C, C) bf16 (HWIO)
    # kw=1 (input col 2j) and kw=2 (input col 2j+1): direct accumulation.
    acc = jnp.dot(om_e, w3[0, 1], preferred_element_type=f32)
    acc += jnp.dot(om_o, w3[0, 2], preferred_element_type=f32)
    acc += jnp.dot(e_e, w3[1, 1], preferred_element_type=f32)
    acc += jnp.dot(e_o, w3[1, 2], preferred_element_type=f32)
    acc += jnp.dot(o_e, w3[2, 1], preferred_element_type=f32)
    acc += jnp.dot(o_o, w3[2, 2], preferred_element_type=f32)

    # kw=0 (input col 2j-1): dot the un-shifted odd-col slabs, then ONE
    # post-matmul shift of the f32 partial by one output column + left-pad mask.
    p = jnp.dot(om_o, w3[0, 0], preferred_element_type=f32)
    p += jnp.dot(e_o, w3[1, 0], preferred_element_type=f32)
    p += jnp.dot(o_o, w3[2, 0], preferred_element_type=f32)
    p = pltpu.roll(p, shift=1, axis=0)               # shift along flattened (i,j)
    j0 = jax.lax.broadcasted_iota(jnp.int32, (TH, Wo, C), 1).reshape(M, C)
    acc += jnp.where(j0 == 0, 0.0, p)                # zero at output col 0

    y4 = _silu(acc * s3_ref[...] + b3_ref[...])      # (M, C) f32

    # ---- channel concat [out2 | out4] written lane-dense -------------------
    if C % 128 == 0:
        o_ref[0, :, :, :C] = y2.reshape(TH, Wo, C).astype(o_ref.dtype)
        o_ref[0, :, :, C:] = y4.reshape(TH, Wo, C).astype(o_ref.dtype)
    else:
        out = jnp.concatenate([y2, y4], axis=-1)
        o_ref[0] = out.reshape(TH, Wo, 2 * C).astype(o_ref.dtype)


# ---------------------------------------------------------------------------
# Wrapper
# ---------------------------------------------------------------------------
def mp_forward(x_nchw, params):
    out_dtype = x_nchw.dtype
    x = jnp.transpose(x_nchw, (0, 2, 3, 1)).astype(jnp.bfloat16)   # NHWC, bf16
    N, H, W, C2 = x.shape
    assert H % 2 == 0 and W % 2 == 0, "MP expects even H, W"
    C = C2 // 2
    Ho, Wo = H // 2, W // 2

    w1 = params["w1"].astype(jnp.bfloat16)                          # (2C, C)
    w2 = params["w2"].astype(jnp.bfloat16)                          # (2C, C)
    w3 = params["w3"].astype(jnp.bfloat16)                          # (3,3,C,C)

    # Free bitcast views: rows split by parity, column parity folded into lanes.
    XR = x.reshape(N, Ho, 2, Wo, 2 * C2)
    XH = x.reshape(N, H, Wo, 2 * C2)

    # Row tile: largest divisor of Ho within a conservative VMEM-derived cap
    # (~20 MiB of blocks + in-kernel slabs; safe under the 32 MiB limit and
    # under v7x's 64 MiB physical VMEM).  For N==1 keep >= 2 grid steps so both
    # v7x TensorCores get work.
    cap = max(1, min(32, (20 * 1024 * 1024) // max(1, 80 * Wo * C)))
    if N == 1:
        cap = min(cap, max(1, Ho // 2))
    TH = 1
    for d in range(1, Ho + 1):
        if Ho % d == 0 and d <= cap:
            TH = d

    vec = lambda: pl.BlockSpec((1, C), lambda b, t: (0, 0))
    out_nhwc = pl.pallas_call(
        fused_mp_kernel,
        out_shape=jax.ShapeDtypeStruct((N, Ho, Wo, 2 * C), out_dtype),
        grid=(N, Ho // TH),
        in_specs=[
            pl.BlockSpec((1, TH, 2, Wo, 2 * C2), lambda b, t: (b, t, 0, 0, 0)),
            pl.BlockSpec((1, 1, Wo, 2 * C2),
                         lambda b, t: (b, jnp.maximum(2 * TH * t - 1, 0), 0, 0)),
            pl.BlockSpec((C2, C), lambda b, t: (0, 0)), vec(), vec(),
            pl.BlockSpec((C2, C), lambda b, t: (0, 0)), vec(), vec(),
            pl.BlockSpec((3, 3, C, C), lambda b, t: (0, 0, 0, 0)), vec(), vec(),
        ],
        out_specs=pl.BlockSpec((1, TH, Wo, 2 * C), lambda b, t: (b, t, 0, 0)),
        compiler_params=pltpu.CompilerParams(
            dimension_semantics=("parallel", "parallel"),
            vmem_limit_bytes=_VMEM_LIMIT),
    )(XR, XH,
      w1, params["s1"], params["b1"],
      w2, params["s2"], params["b2"],
      w3, params["s3"], params["b3"])

    return jnp.transpose(out_nhwc, (0, 3, 1, 2))                    # back to NCHW


# ---------------------------------------------------------------------------
# Pure-JAX reference (mirrors the bf16-matmul / bf16-out3 choices)
# ---------------------------------------------------------------------------
def _convblock_ref(x, w_hwio, scale, bias, stride, pad):
    y = jax.lax.conv_general_dilated(
        x.astype(jnp.bfloat16), w_hwio.astype(jnp.bfloat16),
        window_strides=(stride, stride),
        padding=[(pad, pad), (pad, pad)],
        dimension_numbers=("NHWC", "HWIO", "NHWC"),
        preferred_element_type=jnp.float32)
    y = y * scale + bias
    return y * jax.nn.sigmoid(y)


def mp_reference(x_nchw, params):
    x = jnp.transpose(x_nchw, (0, 2, 3, 1))
    C2 = x.shape[-1]
    C = C2 // 2
    mp = jax.lax.reduce_window(x, -jnp.inf, jax.lax.max,
                               (1, 2, 2, 1), (1, 2, 2, 1), "VALID")
    out2 = _convblock_ref(mp, params["w1"].reshape(1, 1, C2, C),
                          params["s1"], params["b1"], 1, 0)
    out3 = _convblock_ref(x, params["w2"].reshape(1, 1, C2, C),
                          params["s2"], params["b2"], 1, 0)
    out3 = out3.astype(jnp.bfloat16).astype(jnp.float32)   # out3 held in bf16
    out4 = _convblock_ref(out3, params["w3"], params["s3"], params["b3"], 2, 1)
    out = jnp.concatenate([out2, out4], axis=-1)
    return jnp.transpose(out, (0, 3, 1, 2))


# ---------------------------------------------------------------------------
# Deterministic parameter init (ConvBlock: conv weight + folded BN)
# ---------------------------------------------------------------------------
def make_params(key, C):
    C2 = 2 * C
    ks = jax.random.split(key, 15)

    def bn_fold(kg, kb, km, kv, n):
        gamma = jax.random.uniform(kg, (n,), jnp.float32, 0.5, 1.5)
        beta = 0.1 * jax.random.normal(kb, (n,), jnp.float32)
        mean = 0.1 * jax.random.normal(km, (n,), jnp.float32)
        var = jax.random.uniform(kv, (n,), jnp.float32, 0.5, 1.5)
        scale = gamma / jnp.sqrt(var + 1e-5)
        bias = beta - mean * scale
        return scale.reshape(1, n), bias.reshape(1, n)

    w1 = 0.3 * jax.random.normal(ks[0], (C2, C), jnp.float32)        # 1x1
    s1, b1 = bn_fold(ks[1], ks[2], ks[3], ks[4], C)
    w2 = 0.3 * jax.random.normal(ks[5], (C2, C), jnp.float32)        # 1x1
    s2, b2 = bn_fold(ks[6], ks[7], ks[8], ks[9], C)
    w3 = 0.2 * jax.random.normal(ks[10], (3, 3, C, C), jnp.float32)  # 3x3 HWIO
    s3, b3 = bn_fold(ks[11], ks[12], ks[13], ks[14], C)
    return dict(w1=w1, s1=s1, b1=b1, w2=w2, s2=s2, b2=b2, w3=w3, s3=s3, b3=b3)


if __name__ == "__main__":
    key = jax.random.PRNGKey(0)
    k_x, k_p = jax.random.split(key)

    C = 4                      # MP(in_channels=4) -> input has 2*C = 8 channels
    N, H, W = 2, 16, 16
    x = jax.random.normal(k_x, (N, 2 * C, H, W), jnp.float32)   # NCHW like torch
    params = make_params(k_p, C)

    out = jax.jit(mp_forward)(x, params)
    out = jax.block_until_ready(out)

    ref = mp_reference(x, params)
    assert out.shape == (N, 2 * C, H // 2, W // 2), out.shape
    err = float(jnp.max(jnp.abs(out - ref)))
    assert err < 3e-2, f"max abs err {err}"

    print("KERNEL_OK")
</pallas_src>

<mosaic_0001>
module attributes {stable_mosaic.version = 11 : i64} {
  func.func @fused_mp_kernel(%arg0: i32, %arg1: i32, %arg2: memref<1x8x2x8x16xbf16, #tpu.memory_space<vmem>>, %arg3: memref<1x1x8x16xbf16, #tpu.memory_space<vmem>>, %arg4: memref<8x4xbf16, #tpu.memory_space<vmem>>, %arg5: memref<1x4xf32, #tpu.memory_space<vmem>>, %arg6: memref<1x4xf32, #tpu.memory_space<vmem>>, %arg7: memref<8x4xbf16, #tpu.memory_space<vmem>>, %arg8: memref<1x4xf32, #tpu.memory_space<vmem>>, %arg9: memref<1x4xf32, #tpu.memory_space<vmem>>, %arg10: memref<3x3x4x4xbf16, #tpu.memory_space<vmem>>, %arg11: memref<1x4xf32, #tpu.memory_space<vmem>>, %arg12: memref<1x4xf32, #tpu.memory_space<vmem>>, %arg13: memref<1x8x8x8xf32, #tpu.memory_space<vmem>>) attributes {dimension_semantics = [#tpu.dimension_semantics<parallel>, #tpu.dimension_semantics<parallel>], iteration_bounds = array<i64: 2, 1>, scalar_prefetch = 0 : i64, scratch_operands = 0 : i64, tpu.core_type = #tpu.core_type<tc>, window_params = [{transform_indices = @transform_0, window_bounds = array<i64: 1, 8, 2, 8, 16>}, {transform_indices = @transform_1, window_bounds = array<i64: 1, 1, 8, 16>}, {pipeline_mode = #tpu.pipeline_mode<synchronous>, transform_indices = @transform_2, window_bounds = array<i64: 8, 4>}, {pipeline_mode = #tpu.pipeline_mode<synchronous>, transform_indices = @transform_3, window_bounds = array<i64: 1, 4>}, {pipeline_mode = #tpu.pipeline_mode<synchronous>, transform_indices = @transform_4, window_bounds = array<i64: 1, 4>}, {pipeline_mode = #tpu.pipeline_mode<synchronous>, transform_indices = @transform_5, window_bounds = array<i64: 8, 4>}, {pipeline_mode = #tpu.pipeline_mode<synchronous>, transform_indices = @transform_6, window_bounds = array<i64: 1, 4>}, {pipeline_mode = #tpu.pipeline_mode<synchronous>, transform_indices = @transform_7, window_bounds = array<i64: 1, 4>}, {pipeline_mode = #tpu.pipeline_mode<synchronous>, transform_indices = @transform_8, window_bounds = array<i64: 3, 3, 4, 4>}, {pipeline_mode = #tpu.pipeline_mode<synchronous>, transform_indices = @transform_9, window_bounds = array<i64: 1, 4>}, {pipeline_mode = #tpu.pipeline_mode<synchronous>, transform_indices = @transform_10, window_bounds = array<i64: 1, 4>}, {transform_indices = @transform_11, window_bounds = array<i64: 1, 8, 8, 8>}]} {
    %c0 = arith.constant 0 : index
    %c0_0 = arith.constant 0 : index
    %c0_1 = arith.constant 0 : index
    %c0_2 = arith.constant 0 : index
    %c0_3 = arith.constant 0 : index
    %0 = vector.load %arg2[%c0, %c0_0, %c0_1, %c0_2, %c0_3] : memref<1x8x2x8x16xbf16, #tpu.memory_space<vmem>>, vector<1x8x2x8x16xbf16>
    %1 = vector.shape_cast %0 : vector<1x8x2x8x16xbf16> to vector<8x2x8x16xbf16>
    %2 = vector.extract_strided_slice %1 {offsets = [0, 0, 0, 0], sizes = [8, 1, 8, 16], strides = [1, 1, 1, 1]} : vector<8x2x8x16xbf16> to vector<8x1x8x16xbf16>
    %3 = vector.shape_cast %2 : vector<8x1x8x16xbf16> to vector<8x8x16xbf16>
    %4 = vector.extract_strided_slice %1 {offsets = [0, 1, 0, 0], sizes = [8, 1, 8, 16], strides = [1, 1, 1, 1]} : vector<8x2x8x16xbf16> to vector<8x1x8x16xbf16>
    %5 = vector.shape_cast %4 : vector<8x1x8x16xbf16> to vector<8x8x16xbf16>
    %6 = arith.maximumf %3, %5 : vector<8x8x16xbf16>
    %7 = vector.extract_strided_slice %6 {offsets = [0, 0, 0], sizes = [8, 8, 8], strides = [1, 1, 1]} : vector<8x8x16xbf16> to vector<8x8x8xbf16>
    %8 = vector.extract_strided_slice %6 {offsets = [0, 0, 8], sizes = [8, 8, 8], strides = [1, 1, 1]} : vector<8x8x16xbf16> to vector<8x8x8xbf16>
    %9 = arith.maximumf %7, %8 : vector<8x8x8xbf16>
    %10 = vector.shape_cast %9 : vector<8x8x8xbf16> to vector<64x8xbf16>
    %c0_4 = arith.constant 0 : index
    %c0_5 = arith.constant 0 : index
    %11 = vector.load %arg4[%c0_4, %c0_5] : memref<8x4xbf16, #tpu.memory_space<vmem>>, vector<8x4xbf16>
    %cst = arith.constant dense<0.000000e+00> : vector<64x4xf32>
    %12 = tpu.matmul %10, %11, %cst {dimension_numbers = #tpu.dot_dimension_numbers<[1], [0], [0], [1], [0, 0, 1, 1], [], []>} : vector<64x8xbf16>, vector<8x4xbf16>, vector<64x4xf32> -> vector<64x4xf32>
    %c0_6 = arith.constant 0 : index
    %c0_7 = arith.constant 0 : index
    %13 = vector.load %arg5[%c0_6, %c0_7] : memref<1x4xf32, #tpu.memory_space<vmem>>, vector<1x4xf32>
    %14 = vector.broadcast %13 : vector<1x4xf32> to vector<64x4xf32>
    %15 = arith.mulf %12, %14 : vector<64x4xf32>
    %c0_8 = arith.constant 0 : index
    %c0_9 = arith.constant 0 : index
    %16 = vector.load %arg6[%c0_8, %c0_9] : memref<1x4xf32, #tpu.memory_space<vmem>>, vector<1x4xf32>
    %17 = vector.broadcast %16 : vector<1x4xf32> to vector<64x4xf32>
    %18 = arith.addf %15, %17 : vector<64x4xf32>
    %cst_10 = arith.constant 0.000000e+00 : f32
    %19 = vector.broadcast %cst_10 : f32 to vector<64x4xf32>
    %20 = arith.subf %19, %18 : vector<64x4xf32>
    %21 = math.exp %20 : vector<64x4xf32>
    %cst_11 = arith.constant 1.000000e+00 : f32
    %22 = vector.broadcast %cst_11 : f32 to vector<64x4xf32>
    %23 = arith.addf %22, %21 : vector<64x4xf32>
    %24 = tpu.reciprocal %23 {approx = true} : vector<64x4xf32> -> vector<64x4xf32>
    %25 = arith.mulf %18, %24 : vector<64x4xf32>
    %c0_12 = arith.constant 0 : index
    %c0_13 = arith.constant 0 : index
    %26 = vector.load %arg7[%c0_12, %c0_13] : memref<8x4xbf16, #tpu.memory_space<vmem>>, vector<8x4xbf16>
    %c0_14 = arith.constant 0 : index
    %c0_15 = arith.constant 0 : index
    %27 = vector.load %arg8[%c0_14, %c0_15] : memref<1x4xf32, #tpu.memory_space<vmem>>, vector<1x4xf32>
    %c0_16 = arith.constant 0 : index
    %c0_17 = arith.constant 0 : index
    %28 = vector.load %arg9[%c0_16, %c0_17] : memref<1x4xf32, #tpu.memory_space<vmem>>, vector<1x4xf32>
    %29 = vector.extract_strided_slice %3 {offsets = [0, 0, 0], sizes = [8, 8, 8], strides = [1, 1, 1]} : vector<8x8x16xbf16> to vector<8x8x8xbf16>
    %30 = vector.shape_cast %29 : vector<8x8x8xbf16> to vector<64x8xbf16>
    %cst_18 = arith.constant dense<0.000000e+00> : vector<64x4xf32>
    %31 = tpu.matmul %30, %26, %cst_18 {dimension_numbers = #tpu.dot_dimension_numbers<[1], [0], [0], [1], [0, 0, 1, 1], [], []>} : vector<64x8xbf16>, vector<8x4xbf16>, vector<64x4xf32> -> vector<64x4xf32>
    %32 = vector.broadcast %27 : vector<1x4xf32> to vector<64x4xf32>
    %33 = arith.mulf %31, %32 : vector<64x4xf32>
    %34 = vector.broadcast %28 : vector<1x4xf32> to vector<64x4xf32>
    %35 = arith.addf %33, %34 : vector<64x4xf32>
    %cst_19 = arith.constant 0.000000e+00 : f32
    %36 = vector.broadcast %cst_19 : f32 to vector<64x4xf32>
    %37 = arith.subf %36, %35 : vector<64x4xf32>
    %38 = math.exp %37 : vector<64x4xf32>
    %cst_20 = arith.constant 1.000000e+00 : f32
    %39 = vector.broadcast %cst_20 : f32 to vector<64x4xf32>
    %40 = arith.addf %39, %38 : vector<64x4xf32>
    %41 = tpu.reciprocal %40 {approx = true} : vector<64x4xf32> -> vector<64x4xf32>
    %42 = arith.mulf %35, %41 : vector<64x4xf32>
    %43 = arith.truncf %42 : vector<64x4xf32> to vector<64x4xbf16>
    %44 = vector.extract_strided_slice %3 {offsets = [0, 0, 8], sizes = [8, 8, 8], strides = [1, 1, 1]} : vector<8x8x16xbf16> to vector<8x8x8xbf16>
    %45 = vector.shape_cast %44 : vector<8x8x8xbf16> to vector<64x8xbf16>
    %cst_21 = arith.constant dense<0.000000e+00> : vector<64x4xf32>
    %46 = tpu.matmul %45, %26, %cst_21 {dimension_numbers = #tpu.dot_dimension_numbers<[1], [0], [0], [1], [0, 0, 1, 1], [], []>} : vector<64x8xbf16>, vector<8x4xbf16>, vector<64x4xf32> -> vector<64x4xf32>
    %47 = vector.broadcast %27 : vector<1x4xf32> to vector<64x4xf32>
    %48 = arith.mulf %46, %47 : vector<64x4xf32>
    %49 = vector.broadcast %28 : vector<1x4xf32> to vector<64x4xf32>
    %50 = arith.addf %48, %49 : vector<64x4xf32>
    %cst_22 = arith.constant 0.000000e+00 : f32
    %51 = vector.broadcast %cst_22 : f32 to vector<64x4xf32>
    %52 = arith.subf %51, %50 : vector<64x4xf32>
    %53 = math.exp %52 : vector<64x4xf32>
    %cst_23 = arith.constant 1.000000e+00 : f32
    %54 = vector.broadcast %cst_23 : f32 to vector<64x4xf32>
    %55 = arith.addf %54, %53 : vector<64x4xf32>
    %56 = tpu.reciprocal %55 {approx = true} : vector<64x4xf32> -> vector<64x4xf32>
    %57 = arith.mulf %50, %56 : vector<64x4xf32>
    %58 = arith.truncf %57 : vector<64x4xf32> to vector<64x4xbf16>
    %59 = vector.extract_strided_slice %5 {offsets = [0, 0, 0], sizes = [8, 8, 8], strides = [1, 1, 1]} : vector<8x8x16xbf16> to vector<8x8x8xbf16>
    %60 = vector.shape_cast %59 : vector<8x8x8xbf16> to vector<64x8xbf16>
    %cst_24 = arith.constant dense<0.000000e+00> : vector<64x4xf32>
    %61 = tpu.matmul %60, %26, %cst_24 {dimension_numbers = #tpu.dot_dimension_numbers<[1], [0], [0], [1], [0, 0, 1, 1], [], []>} : vector<64x8xbf16>, vector<8x4xbf16>, vector<64x4xf32> -> vector<64x4xf32>
    %62 = vector.broadcast %27 : vector<1x4xf32> to vector<64x4xf32>
    %63 = arith.mulf %61, %62 : vector<64x4xf32>
    %64 = vector.broadcast %28 : vector<1x4xf32> to vector<64x4xf32>
    %65 = arith.addf %63, %64 : vector<64x4xf32>
    %cst_25 = arith.constant 0.000000e+00 : f32
    %66 = vector.broadcast %cst_25 : f32 to vector<64x4xf32>
    %67 = arith.subf %66, %65 : vector<64x4xf32>
    %68 = math.exp %67 : vector<64x4xf32>
    %cst_26 = arith.constant 1.000000e+00 : f32
    %69 = vector.broadcast %cst_26 : f32 to vector<64x4xf32>
    %70 = arith.addf %69, %68 : vector<64x4xf32>
    %71 = tpu.reciprocal %70 {approx = true} : vector<64x4xf32> -> vector<64x4xf32>
    %72 = arith.mulf %65, %71 : vector<64x4xf32>
    %73 = arith.truncf %72 : vector<64x4xf32> to vector<64x4xbf16>
    %74 = vector.extract_strided_slice %5 {offsets = [0, 0, 8], sizes = [8, 8, 8], strides = [1, 1, 1]} : vector<8x8x16xbf16> to vector<8x8x8xbf16>
    %75 = vector.shape_cast %74 : vector<8x8x8xbf16> to vector<64x8xbf16>
    %cst_27 = arith.constant dense<0.000000e+00> : vector<64x4xf32>
    %76 = tpu.matmul %75, %26, %cst_27 {dimension_numbers = #tpu.dot_dimension_numbers<[1], [0], [0], [1], [0, 0, 1, 1], [], []>} : vector<64x8xbf16>, vector<8x4xbf16>, vector<64x4xf32> -> vector<64x4xf32>
    %77 = vector.broadcast %27 : vector<1x4xf32> to vector<64x4xf32>
    %78 = arith.mulf %76, %77 : vector<64x4xf32>
    %79 = vector.broadcast %28 : vector<1x4xf32> to vector<64x4xf32>
    %80 = arith.addf %78, %79 : vector<64x4xf32>
    %cst_28 = arith.constant 0.000000e+00 : f32
    %81 = vector.broadcast %cst_28 : f32 to vector<64x4xf32>
    %82 = arith.subf %81, %80 : vector<64x4xf32>
    %83 = math.exp %82 : vector<64x4xf32>
    %cst_29 = arith.constant 1.000000e+00 : f32
    %84 = vector.broadcast %cst_29 : f32 to vector<64x4xf32>
    %85 = arith.addf %84, %83 : vector<64x4xf32>
    %86 = tpu.reciprocal %85 {approx = true} : vector<64x4xf32> -> vector<64x4xf32>
    %87 = arith.mulf %80, %86 : vector<64x4xf32>
    %88 = arith.truncf %87 : vector<64x4xf32> to vector<64x4xbf16>
    %c0_30 = arith.constant 0 : index
    %c0_31 = arith.constant 0 : index
    %c0_32 = arith.constant 0 : index
    %c0_33 = arith.constant 0 : index
    %89 = vector.load %arg3[%c0_30, %c0_31, %c0_32, %c0_33] : memref<1x1x8x16xbf16, #tpu.memory_space<vmem>>, vector<1x1x8x16xbf16>
    %90 = vector.shape_cast %89 : vector<1x1x8x16xbf16> to vector<8x16xbf16>
    %91 = vector.extract_strided_slice %90 {offsets = [0, 0], sizes = [8, 8], strides = [1, 1]} : vector<8x16xbf16> to vector<8x8xbf16>
    %cst_34 = arith.constant dense<0.000000e+00> : vector<8x4xf32>
    %92 = tpu.matmul %91, %26, %cst_34 {dimension_numbers = #tpu.dot_dimension_numbers<[1], [0], [0], [1], [0, 0, 1, 1], [], []>} : vector<8x8xbf16>, vector<8x4xbf16>, vector<8x4xf32> -> vector<8x4xf32>
    %93 = vector.broadcast %27 : vector<1x4xf32> to vector<8x4xf32>
    %94 = arith.mulf %92, %93 : vector<8x4xf32>
    %95 = vector.broadcast %28 : vector<1x4xf32> to vector<8x4xf32>
    %96 = arith.addf %94, %95 : vector<8x4xf32>
    %cst_35 = arith.constant 0.000000e+00 : f32
    %97 = vector.broadcast %cst_35 : f32 to vector<8x4xf32>
    %98 = arith.subf %97, %96 : vector<8x4xf32>
    %99 = math.exp %98 : vector<8x4xf32>
    %cst_36 = arith.constant 1.000000e+00 : f32
    %100 = vector.broadcast %cst_36 : f32 to vector<8x4xf32>
    %101 = arith.addf %100, %99 : vector<8x4xf32>
    %102 = tpu.reciprocal %101 {approx = true} : vector<8x4xf32> -> vector<8x4xf32>
    %103 = arith.mulf %96, %102 : vector<8x4xf32>
    %104 = arith.truncf %103 : vector<8x4xf32> to vector<8x4xbf16>
    %105 = vector.extract_strided_slice %90 {offsets = [0, 8], sizes = [8, 8], strides = [1, 1]} : vector<8x16xbf16> to vector<8x8xbf16>
    %cst_37 = arith.constant dense<0.000000e+00> : vector<8x4xf32>
    %106 = tpu.matmul %105, %26, %cst_37 {dimension_numbers = #tpu.dot_dimension_numbers<[1], [0], [0], [1], [0, 0, 1, 1], [], []>} : vector<8x8xbf16>, vector<8x4xbf16>, vector<8x4xf32> -> vector<8x4xf32>
    %107 = vector.broadcast %27 : vector<1x4xf32> to vector<8x4xf32>
    %108 = arith.mulf %106, %107 : vector<8x4xf32>
    %109 = vector.broadcast %28 : vector<1x4xf32> to vector<8x4xf32>
    %110 = arith.addf %108, %109 : vector<8x4xf32>
    %cst_38 = arith.constant 0.000000e+00 : f32
    %111 = vector.broadcast %cst_38 : f32 to vector<8x4xf32>
    %112 = arith.subf %111, %110 : vector<8x4xf32>
    %113 = math.exp %112 : vector<8x4xf32>
    %cst_39 = arith.constant 1.000000e+00 : f32
    %114 = vector.broadcast %cst_39 : f32 to vector<8x4xf32>
    %115 = arith.addf %114, %113 : vector<8x4xf32>
    %116 = tpu.reciprocal %115 {approx = true} : vector<8x4xf32> -> vector<8x4xf32>
    %117 = arith.mulf %110, %116 : vector<8x4xf32>
    %118 = arith.truncf %117 : vector<8x4xf32> to vector<8x4xbf16>
    %c0_i32 = arith.constant 0 : i32
    %119 = arith.cmpi eq, %arg1, %c0_i32 : i32
    %cst_40 = arith.constant 0.000000e+00 : bf16
    %120 = vector.broadcast %cst_40 : bf16 to vector<8x4xbf16>
    %121 = arith.select %119, %120, %104 : vector<8x4xbf16>
    %c0_i32_41 = arith.constant 0 : i32
    %122 = arith.cmpi eq, %arg1, %c0_i32_41 : i32
    %cst_42 = arith.constant 0.000000e+00 : bf16
    %123 = vector.broadcast %cst_42 : bf16 to vector<8x4xbf16>
    %124 = arith.select %122, %123, %118 : vector<8x4xbf16>
    %125 = vector.shape_cast %121 : vector<8x4xbf16> to vector<1x8x4xbf16>
    %126 = vector.shape_cast %73 : vector<64x4xbf16> to vector<8x8x4xbf16>
    %127 = vector.extract_strided_slice %126 {offsets = [0, 0, 0], sizes = [7, 8, 4], strides = [1, 1, 1]} : vector<8x8x4xbf16> to vector<7x8x4xbf16>
    %128 = tpu.concatenate %125, %127 in 0 : vector<1x8x4xbf16>, vector<7x8x4xbf16> -> vector<8x8x4xbf16>
    %129 = vector.shape_cast %128 : vector<8x8x4xbf16> to vector<64x4xbf16>
    %130 = vector.shape_cast %124 : vector<8x4xbf16> to vector<1x8x4xbf16>
    %131 = vector.shape_cast %88 : vector<64x4xbf16> to vector<8x8x4xbf16>
    %132 = vector.extract_strided_slice %131 {offsets = [0, 0, 0], sizes = [7, 8, 4], strides = [1, 1, 1]} : vector<8x8x4xbf16> to vector<7x8x4xbf16>
    %133 = tpu.concatenate %130, %132 in 0 : vector<1x8x4xbf16>, vector<7x8x4xbf16> -> vector<8x8x4xbf16>
    %134 = vector.shape_cast %133 : vector<8x8x4xbf16> to vector<64x4xbf16>
    %c0_43 = arith.constant 0 : index
    %c0_44 = arith.constant 0 : index
    %c0_45 = arith.constant 0 : index
    %c0_46 = arith.constant 0 : index
    %135 = vector.load %arg10[%c0_43, %c0_44, %c0_45, %c0_46] : memref<3x3x4x4xbf16, #tpu.memory_space<vmem>>, vector<3x3x4x4xbf16>
    %136 = vector.extract_strided_slice %135 {offsets = [0, 1, 0, 0], sizes = [1, 1, 4, 4], strides = [1, 1, 1, 1]} : vector<3x3x4x4xbf16> to vector<1x1x4x4xbf16>
    %137 = vector.shape_cast %136 : vector<1x1x4x4xbf16> to vector<4x4xbf16>
    %cst_47 = arith.constant dense<0.000000e+00> : vector<64x4xf32>
    %138 = tpu.matmul %129, %137, %cst_47 {dimension_numbers = #tpu.dot_dimension_numbers<[1], [0], [0], [1], [0, 0, 1, 1], [], []>} : vector<64x4xbf16>, vector<4x4xbf16>, vector<64x4xf32> -> vector<64x4xf32>
    %139 = vector.extract_strided_slice %135 {offsets = [0, 2, 0, 0], sizes = [1, 1, 4, 4], strides = [1, 1, 1, 1]} : vector<3x3x4x4xbf16> to vector<1x1x4x4xbf16>
    %140 = vector.shape_cast %139 : vector<1x1x4x4xbf16> to vector<4x4xbf16>
    %cst_48 = arith.constant dense<0.000000e+00> : vector<64x4xf32>
    %141 = tpu.matmul %134, %140, %cst_48 {dimension_numbers = #tpu.dot_dimension_numbers<[1], [0], [0], [1], [0, 0, 1, 1], [], []>} : vector<64x4xbf16>, vector<4x4xbf16>, vector<64x4xf32> -> vector<64x4xf32>
    %142 = arith.addf %138, %141 : vector<64x4xf32>
    %143 = vector.extract_strided_slice %135 {offsets = [1, 1, 0, 0], sizes = [1, 1, 4, 4], strides = [1, 1, 1, 1]} : vector<3x3x4x4xbf16> to vector<1x1x4x4xbf16>
    %144 = vector.shape_cast %143 : vector<1x1x4x4xbf16> to vector<4x4xbf16>
    %cst_49 = arith.constant dense<0.000000e+00> : vector<64x4xf32>
    %145 = tpu.matmul %43, %144, %cst_49 {dimension_numbers = #tpu.dot_dimension_numbers<[1], [0], [0], [1], [0, 0, 1, 1], [], []>} : vector<64x4xbf16>, vector<4x4xbf16>, vector<64x4xf32> -> vector<64x4xf32>
    %146 = arith.addf %142, %145 : vector<64x4xf32>
    %147 = vector.extract_strided_slice %135 {offsets = [1, 2, 0, 0], sizes = [1, 1, 4, 4], strides = [1, 1, 1, 1]} : vector<3x3x4x4xbf16> to vector<1x1x4x4xbf16>
    %148 = vector.shape_cast %147 : vector<1x1x4x4xbf16> to vector<4x4xbf16>
    %cst_50 = arith.constant dense<0.000000e+00> : vector<64x4xf32>
    %149 = tpu.matmul %58, %148, %cst_50 {dimension_numbers = #tpu.dot_dimension_numbers<[1], [0], [0], [1], [0, 0, 1, 1], [], []>} : vector<64x4xbf16>, vector<4x4xbf16>, vector<64x4xf32> -> vector<64x4xf32>
    %150 = arith.addf %146, %149 : vector<64x4xf32>
    %151 = vector.extract_strided_slice %135 {offsets = [2, 1, 0, 0], sizes = [1, 1, 4, 4], strides = [1, 1, 1, 1]} : vector<3x3x4x4xbf16> to vector<1x1x4x4xbf16>
    %152 = vector.shape_cast %151 : vector<1x1x4x4xbf16> to vector<4x4xbf16>
    %cst_51 = arith.constant dense<0.000000e+00> : vector<64x4xf32>
    %153 = tpu.matmul %73, %152, %cst_51 {dimension_numbers = #tpu.dot_dimension_numbers<[1], [0], [0], [1], [0, 0, 1, 1], [], []>} : vector<64x4xbf16>, vector<4x4xbf16>, vector<64x4xf32> -> vector<64x4xf32>
    %154 = arith.addf %150, %153 : vector<64x4xf32>
    %155 = vector.extract_strided_slice %135 {offsets = [2, 2, 0, 0], sizes = [1, 1, 4, 4], strides = [1, 1, 1, 1]} : vector<3x3x4x4xbf16> to vector<1x1x4x4xbf16>
    %156 = vector.shape_cast %155 : vector<1x1x4x4xbf16> to vector<4x4xbf16>
    %cst_52 = arith.constant dense<0.000000e+00> : vector<64x4xf32>
    %157 = tpu.matmul %88, %156, %cst_52 {dimension_numbers = #tpu.dot_dimension_numbers<[1], [0], [0], [1], [0, 0, 1, 1], [], []>} : vector<64x4xbf16>, vector<4x4xbf16>, vector<64x4xf32> -> vector<64x4xf32>
    %158 = arith.addf %154, %157 : vector<64x4xf32>
    %159 = vector.extract_strided_slice %135 {offsets = [0, 0, 0, 0], sizes = [1, 1, 4, 4], strides = [1, 1, 1, 1]} : vector<3x3x4x4xbf16> to vector<1x1x4x4xbf16>
    %160 = vector.shape_cast %159 : vector<1x1x4x4xbf16> to vector<4x4xbf16>
    %cst_53 = arith.constant dense<0.000000e+00> : vector<64x4xf32>
    %161 = tpu.matmul %134, %160, %cst_53 {dimension_numbers = #tpu.dot_dimension_numbers<[1], [0], [0], [1], [0, 0, 1, 1], [], []>} : vector<64x4xbf16>, vector<4x4xbf16>, vector<64x4xf32> -> vector<64x4xf32>
    %162 = vector.extract_strided_slice %135 {offsets = [1, 0, 0, 0], sizes = [1, 1, 4, 4], strides = [1, 1, 1, 1]} : vector<3x3x4x4xbf16> to vector<1x1x4x4xbf16>
    %163 = vector.shape_cast %162 : vector<1x1x4x4xbf16> to vector<4x4xbf16>
    %cst_54 = arith.constant dense<0.000000e+00> : vector<64x4xf32>
    %164 = tpu.matmul %58, %163, %cst_54 {dimension_numbers = #tpu.dot_dimension_numbers<[1], [0], [0], [1], [0, 0, 1, 1], [], []>} : vector<64x4xbf16>, vector<4x4xbf16>, vector<64x4xf32> -> vector<64x4xf32>
    %165 = arith.addf %161, %164 : vector<64x4xf32>
    %166 = vector.extract_strided_slice %135 {offsets = [2, 0, 0, 0], sizes = [1, 1, 4, 4], strides = [1, 1, 1, 1]} : vector<3x3x4x4xbf16> to vector<1x1x4x4xbf16>
    %167 = vector.shape_cast %166 : vector<1x1x4x4xbf16> to vector<4x4xbf16>
    %cst_55 = arith.constant dense<0.000000e+00> : vector<64x4xf32>
    %168 = tpu.matmul %88, %167, %cst_55 {dimension_numbers = #tpu.dot_dimension_numbers<[1], [0], [0], [1], [0, 0, 1, 1], [], []>} : vector<64x4xbf16>, vector<4x4xbf16>, vector<64x4xf32> -> vector<64x4xf32>
    %169 = arith.addf %165, %168 : vector<64x4xf32>
    %c1_i32 = arith.constant 1 : i32
    %170 = tpu.dynamic_rotate %169 by %c1_i32 dim 0 : vector<64x4xf32>, i32 -> vector<64x4xf32>
    %171 = tpu.iota {dimensions = array<i32: 1>} : vector<8x8x4xi32>
    %172 = vector.shape_cast %171 : vector<8x8x4xi32> to vector<64x4xi32>
    %c0_i32_56 = arith.constant 0 : i32
    %173 = vector.broadcast %c0_i32_56 : i32 to vector<64x4xi32>
    %174 = arith.cmpi eq, %172, %173 : vector<64x4xi32>
    %cst_57 = arith.constant 0.000000e+00 : f32
    %175 = vector.broadcast %cst_57 : f32 to vector<64x4xf32>
    %176 = arith.select %174, %175, %170 : vector<64x4xi1>, vector<64x4xf32>
    %177 = arith.addf %158, %176 : vector<64x4xf32>
    %c0_58 = arith.constant 0 : index
    %c0_59 = arith.constant 0 : index
    %178 = vector.load %arg11[%c0_58, %c0_59] : memref<1x4xf32, #tpu.memory_space<vmem>>, vector<1x4xf32>
    %179 = vector.broadcast %178 : vector<1x4xf32> to vector<64x4xf32>
    %180 = arith.mulf %177, %179 : vector<64x4xf32>
    %c0_60 = arith.constant 0 : index
    %c0_61 = arith.constant 0 : index
    %181 = vector.load %arg12[%c0_60, %c0_61] : memref<1x4xf32, #tpu.memory_space<vmem>>, vector<1x4xf32>
    %182 = vector.broadcast %181 : vector<1x4xf32> to vector<64x4xf32>
    %183 = arith.addf %180, %182 : vector<64x4xf32>
    %cst_62 = arith.constant 0.000000e+00 : f32
    %184 = vector.broadcast %cst_62 : f32 to vector<64x4xf32>
    %185 = arith.subf %184, %183 : vector<64x4xf32>
    %186 = math.exp %185 : vector<64x4xf32>
    %cst_63 = arith.constant 1.000000e+00 : f32
    %187 = vector.broadcast %cst_63 : f32 to vector<64x4xf32>
    %188 = arith.addf %187, %186 : vector<64x4xf32>
    %189 = tpu.reciprocal %188 {approx = true} : vector<64x4xf32> -> vector<64x4xf32>
    %190 = arith.mulf %183, %189 : vector<64x4xf32>
    %191 = tpu.concatenate %25, %190 in 1 : vector<64x4xf32>, vector<64x4xf32> -> vector<64x8xf32>
    %192 = vector.shape_cast %191 : vector<64x8xf32> to vector<8x8x8xf32>
    %c0_64 = arith.constant 0 : index
    %c0_65 = arith.constant 0 : index
    %c0_66 = arith.constant 0 : index
    %c0_67 = arith.constant 0 : index
    %193 = vector.load %arg13[%c0_64, %c0_65, %c0_66, %c0_67] : memref<1x8x8x8xf32, #tpu.memory_space<vmem>>, vector<1x8x8x8xf32>
    %194 = vector.shape_cast %193 : vector<1x8x8x8xf32> to vector<8x8x8xf32>
    %195 = vector.shape_cast %192 : vector<8x8x8xf32> to vector<1x8x8x8xf32>
    tpu.vector_store %arg13[%c0_64, %c0_65, %c0_66, %c0_67], %195 {strides = array<i32>} : memref<1x8x8x8xf32, #tpu.memory_space<vmem>>, vector<1x8x8x8xf32>,
    return
  }
  func.func @transform_0(%arg0: i32, %arg1: i32) -> (i32, i32, i32, i32, i32) {
    %c0_i32 = arith.constant 0 : i32
    %c0_i32_0 = arith.constant 0 : i32
    %c0_i32_1 = arith.constant 0 : i32
    %c0_i32_2 = arith.constant 0 : i32
    return %arg0, %arg1, %c0_i32, %c0_i32_0, %c0_i32_1 : i32, i32, i32, i32, i32
  }
  func.func @transform_1(%arg0: i32, %arg1: i32) -> (i32, i32, i32, i32) {
    %c16_i32 = arith.constant 16 : i32
    %0 = arith.muli %c16_i32, %arg1 : i32
    %c1_i32 = arith.constant 1 : i32
    %1 = arith.subi %0, %c1_i32 : i32
    %c0_i32 = arith.constant 0 : i32
    %2 = arith.maxsi %1, %c0_i32 : i32
    %c0_i32_0 = arith.constant 0 : i32
    %c0_i32_1 = arith.constant 0 : i32
    %c0_i32_2 = arith.constant 0 : i32
    return %arg0, %2, %c0_i32_0, %c0_i32_1 : i32, i32, i32, i32
  }
  func.func @transform_2(%arg0: i32, %arg1: i32) -> (i32, i32) {
    %c0_i32 = arith.constant 0 : i32
    %c0_i32_0 = arith.constant 0 : i32
    %c0_i32_1 = arith.constant 0 : i32
    return %c0_i32, %c0_i32_0 : i32, i32
  }
  func.func @transform_3(%arg0: i32, %arg1: i32) -> (i32, i32) {
    %c0_i32 = arith.constant 0 : i32
    %c0_i32_0 = arith.constant 0 : i32
    %c0_i32_1 = arith.constant 0 : i32
    return %c0_i32, %c0_i32_0 : i32, i32
  }
  func.func @transform_4(%arg0: i32, %arg1: i32) -> (i32, i32) {
    %c0_i32 = arith.constant 0 : i32
    %c0_i32_0 = arith.constant 0 : i32
    %c0_i32_1 = arith.constant 0 : i32
    return %c0_i32, %c0_i32_0 : i32, i32
  }
  func.func @transform_5(%arg0: i32, %arg1: i32) -> (i32, i32) {
    %c0_i32 = arith.constant 0 : i32
    %c0_i32_0 = arith.constant 0 : i32
    %c0_i32_1 = arith.constant 0 : i32
    return %c0_i32, %c0_i32_0 : i32, i32
  }
  func.func @transform_6(%arg0: i32, %arg1: i32) -> (i32, i32) {
    %c0_i32 = arith.constant 0 : i32
    %c0_i32_0 = arith.constant 0 : i32
    %c0_i32_1 = arith.constant 0 : i32
    return %c0_i32, %c0_i32_0 : i32, i32
  }
  func.func @transform_7(%arg0: i32, %arg1: i32) -> (i32, i32) {
    %c0_i32 = arith.constant 0 : i32
    %c0_i32_0 = arith.constant 0 : i32
    %c0_i32_1 = arith.constant 0 : i32
    return %c0_i32, %c0_i32_0 : i32, i32
  }
  func.func @transform_8(%arg0: i32, %arg1: i32) -> (i32, i32, i32, i32) {
    %c0_i32 = arith.constant 0 : i32
    %c0_i32_0 = arith.constant 0 : i32
    %c0_i32_1 = arith.constant 0 : i32
    %c0_i32_2 = arith.constant 0 : i32
    %c0_i32_3 = arith.constant 0 : i32
    return %c0_i32, %c0_i32_0, %c0_i32_1, %c0_i32_2 : i32, i32, i32, i32
  }
  func.func @transform_9(%arg0: i32, %arg1: i32) -> (i32, i32) {
    %c0_i32 = arith.constant 0 : i32
    %c0_i32_0 = arith.constant 0 : i32
    %c0_i32_1 = arith.constant 0 : i32
    return %c0_i32, %c0_i32_0 : i32, i32
  }
  func.func @transform_10(%arg0: i32, %arg1: i32) -> (i32, i32) {
    %c0_i32 = arith.constant 0 : i32
    %c0_i32_0 = arith.constant 0 : i32
    %c0_i32_1 = arith.constant 0 : i32
    return %c0_i32, %c0_i32_0 : i32, i32
  }
  func.func @transform_11(%arg0: i32, %arg1: i32) -> (i32, i32, i32, i32) {
    %c0_i32 = arith.constant 0 : i32
    %c0_i32_0 = arith.constant 0 : i32
    %c0_i32_1 = arith.constant 0 : i32
    return %arg0, %arg1, %c0_i32, %c0_i32_0 : i32, i32, i32, i32
  }
}

</mosaic_0001>

<bundles_post_ra>
// kernel: mp_forward.1
= control target key start
LH: loop header
LB: loop body
LE: loop exit
PB: predicated region body
PF: predicated region fallthrough
CT: control target
= control target key end

     0   :  { %s3256_s17 = smov 0   ;;  %s3258_s18 = smov 0   ;;  %s3983_s0 = inlined_call_operand.vmem [shape: bf16[2,8,2,8,16], index: 0, kind: input, shape index: {}]   ;;  %s3984_s1 = inlined_call_operand.vmem [shape: bf16[2,16,8,16], index: 1, kind: input, shape index: {}]   ;;  %s3985_s2 = inlined_call_operand.vmem [shape: bf16[8,4], index: 2, kind: input, shape index: {}]   ;;  %s3986_s3 = inlined_call_operand.vmem [shape: f32[1,4], index: 3, kind: input, shape index: {}]   ;;  %s3987_s4 = inlined_call_operand.vmem [shape: f32[1,4], index: 4, kind: input, shape index: {}]   ;;  %s3988_s5 = inlined_call_operand.vmem [shape: bf16[8,4], index: 5, kind: input, shape index: {}]   ;;  %s3989_s6 = inlined_call_operand.vmem [shape: f32[1,4], index: 6, kind: input, shape index: {}]   ;;  %s3990_s7 = inlined_call_operand.vmem [shape: f32[1,4], index: 7, kind: input, shape index: {}]   ;;  %s3991_s8 = inlined_call_operand.vmem [shape: bf16[3,3,4,4], index: 8, kind: input, shape index: {}]   ;;  %s3992_s9 = inlined_call_operand.vmem [shape: f32[1,4], index: 9, kind: input, shape index: {}]   ;;  %s3993_s10 = inlined_call_operand.vmem [shape: f32[1,4], index: 10, kind: input, shape index: {}]   ;;  %s3994_s11 = inlined_call_operand.vmem [shape: f32[2,8,8,8], index: 11, kind: output, shape index: {}]  }
   0x1   :  { %s3260_s19 = smov 0  }
   0x2 LB: > { %s33_s20 = sadd.s32 1, %s3185_s18  ;;  %p2547_p0 = scmp.ge.s32.totalorder %s3189_s19, 1  ;;  %s3189_s19 = sphi %s3260_s19, %s21_s19   ;;  %s3185_s18 = sphi %s3258_s18, %s3996_s18   ;;  %s3181_s17 = sphi %s3256_s17, %s3995_s17  }
   0x3   : > { %p35_p1 = scmp.ge.s32.totalorder %s33_s20, 2  ;;  %p390_p2 = scmp.lt.s32.totalorder %s3189_s19, 3 }
   0x5   : > { %s3998_s20 = smov (%p35_p1, %s33_s20), 0  ;;  %p391_p3 = pnand %p2547_p0, %p390_p2 }
   0x6   : > { %p452_p4 = scmp.lt.s32.totalorder (!%p391_p3), %s3181_s17, 1  ;;  %v553_v0 = vld [vmem:[%s3985_s2] sm:$0xf] (!%p391_p3)  ;;  %vm587_vm0 = vcmask (!%p391_p3), 1043456   ;;  %s3191_s29 = smov (!%p391_p3), 120   ;;  %vm574_vm1 = vcmask (!%p391_p3), 64512  }
   0x7   : > { %394 = sbr.rel (%p391_p3) target bundleno = 910 (0x38e), region = 64  ;;  %2922 = vmatprep.subr.msk.bf16.mxu1 (!%p391_p3), %vm587_vm0, %v553_v0  ;;  %v589_v1 = vsel (!%p391_p3), %vm587_vm0, %v553_v0, 0  ;;  %v3290_v2 = vld [vmem:[%s3988_s5] sm:$0xf] (!%p391_p3)  ;;  %vm3193_vm2 = vmmov (!%p391_p3), 0   ;;  %vm1554_vm3 = vcmask (!%p391_p3), 1041408  }
   0x8   : > { %2713 = vmatpush3.bf16.msra.mxu1 (!%p391_p3), %v589_v1  ;;  %2924 = vmatprep.subr.msk.bf16.mxu0 (!%p391_p3), %vm587_vm0, %v3290_v2  ;;  %v3312_v19 = vsel (!%p391_p3), %vm587_vm0, %v3290_v2, 0  ;;  %vm1541_vm4 = vcmask (!%p391_p3), 31744  }
   0x9   : > { %2923 = vmatprep.subr.msk.bf16.mxu1 (!%p391_p3), %vm587_vm0, %v3290_v2  ;;  %2733 = vmatpush3.bf16.msra.mxu0 (!%p391_p3), %v3312_v19 }
   0xa   : > { %2927 = vmatprep.subr.msk.bf16.mxu0 (!%p391_p3), %vm587_vm0, %v3290_v2 }
   0xe   : > { %s4000_s17 = smov (!%p452_p4, %s3181_s17), 1 }
   0xf   : > { %s3279_s23 = sshll.u32 %s4000_s17, 6 }
  0x10   : > { %s3285_s26 = scalar_lea.vmem %s3983_s0, %s3279_s23  ;;  %s473_s13 = scalar_lea.vmem %s3984_s1, %s3279_s23 }
  0x11   : > { %v493_v3 = vld [vmem:[%s3285_s26 + $0x10] sm:$0xf]  ;;  %v494_v4 = vld [vmem:[%s3285_s26 + $0x14] sm:$0xf]  ;;  %v495_v5 = vld [vmem:[%s3285_s26 + $0x18] sm:$0xf]  ;;  %s3941_s17 = scalar_lea.vmem %s3994_s11, %s3279_s23 }
  0x12   : > { %v496_v6 = vld [vmem:[%s3285_s26 + $0x1c] sm:$0xf]  ;;  %v507_v7 = vmax.bf16 %v494_v4, %v493_v3  ;;  %v489_v8 = vld [vmem:[%s3285_s26] sm:$0xf]  ;;  %v490_v9 = vld [vmem:[%s3285_s26 + $0x4] sm:$0xf]  ;;  %v2565_v28 = vcombine.low %v493_v3, %v495_v5 }
  0x13   : > { %v491_v10 = vld [vmem:[%s3285_s26 + $0x8] sm:$0xf]  ;;  %v492_v11 = vld [vmem:[%s3285_s26 + $0xc] sm:$0xf]  ;;  %v505_v12 = vmax.bf16 %v490_v9, %v489_v8  ;;  %v508_v13 = vmax.bf16 %v496_v6, %v495_v5  ;;  %v497_v17 = vld [vmem:[%s3285_s26 + $0x20] sm:$0xf]  ;;  %v3327_v30 = vcombine.low %v494_v4, %v496_v6 }
  0x14   : > { %525 = vrot.lane.b32.xlu1 %v507_v7, %s3191_s29  ;;  %v506_v14 = vmax.bf16 %v492_v11, %v491_v10  ;;  %v499_v15 = vld [vmem:[%s3285_s26 + $0x28] sm:$0xf]  ;;  %v500_v16 = vld [vmem:[%s3285_s26 + $0x2c] sm:$0xf]  ;;  %v498_v18 = vld [vmem:[%s3285_s26 + $0x24] sm:$0xf]  ;;  %v2564_v29 = vcombine.low %v489_v8, %v491_v10  ;;  %v3330_v31 = vcombine.low %v490_v9, %v492_v11 }
  0x15   : > { %521 = vrot.lane.b32.xlu0 %v505_v12, %s3191_s29  ;;  %v510_v20 = vmax.bf16 %v500_v16, %v499_v15  ;;  %v509_v21 = vmax.bf16 %v498_v18, %v497_v17  ;;  %v503_v22 = vld [vmem:[%s3285_s26 + $0x38] sm:$0xf]  ;;  %v504_v23 = vld [vmem:[%s3285_s26 + $0x3c] sm:$0xf]  ;;  %v501_v24 = vld [vmem:[%s3285_s26 + $0x30] sm:$0xf]  ;;  %v3335_v32 = vcombine.low %v498_v18, %v500_v16  ;;  %v2566_v33 = vcombine.low %v497_v17, %v499_v15 }
  0x16   : > { %v502_v25 = vld [vmem:[%s3285_s26 + $0x34] sm:$0xf]  ;;  %v512_v26 = vmax.bf16 %v504_v23, %v503_v22  ;;  %v2567_v35 = vcombine.low %v501_v24, %v503_v22  ;;  %v3351_v36 = vld [vmem:[%s473_s13] sm:$0xf]  ;;  %v1529_v4 = vld [vmem:[%s3991_s8 + $0x6] sm:$0x3] }
  0x17   : > { %v511_v27 = vmax.bf16 %v502_v25, %v501_v24  ;;  %v3341_v34 = vcombine.low %v502_v25, %v504_v23  ;;  %v2591_v37 = vcombine.low %v3351_v36, %v3351_v36  ;;  %v2062_v5 = vsel %vm1554_vm3, %v1529_v4, 0  ;;  %v1528_v6 = vld [vmem:[%s3991_s8 + $0x4] sm:$0x3]  ;;  %v3406_v8 = vld [vmem:[%s3991_s8] sm:$0x3] }
  0x18   : > { %527 = vrot.lane.b32.xlu1 %v508_v13, %s3191_s29  ;;  %v3413_v9 = vld [vmem:[%s3991_s8 + $0x2] sm:$0x3]  ;;  %v3435_v16 = vld [vmem:[%s3990_s7] ss:$0 sm:$0xff] }
  0x19   : > { %523 = vrot.lane.b32.xlu0 %v506_v14, %s3191_s29 }
  0x1c   : > { %531 = vrot.lane.b32.xlu1 %v510_v20, %s3191_s29 }
  0x1d   : > { %529 = vrot.lane.b32.xlu0 %v509_v21, %s3191_s29 }
  0x20   : > { %535 = vrot.lane.b32.xlu1 %v512_v26, %s3191_s29 }
  0x21   : > { %533 = vrot.lane.b32.xlu0 %v511_v27, %s3191_s29 }
  0x24   : > { %919 = vrot.lane.b32.xlu1 %v2565_v28, %s3191_s29 }
  0x25   : > { %917 = vrot.lane.b32.xlu0 %v2564_v29, %s3191_s29 }
  0x28   : > { %1237 = vrot.lane.b32.xlu1 %v3327_v30, %s3191_s29 }
  0x29   : > { %1235 = vrot.lane.b32.xlu0 %v3330_v31, %s3191_s29 }
  0x2c   : > { %1239 = vrot.lane.b32.xlu1 %v3335_v32, %s3191_s29 }
  0x2d   : > { %921 = vrot.lane.b32.xlu0 %v2566_v33, %s3191_s29 }
  0x30   : > { %1241 = vrot.lane.b32.xlu1 %v3341_v34, %s3191_s29 }
  0x31   : > { %923 = vrot.lane.b32.xlu0 %v2567_v35, %s3191_s29 }
  0x35   : > { %1444 = vrot.lane.b32.xlu0 %v2591_v37, %s3191_s29  ;;  %s3195_s29 = smov 4  }
  0x86   : > { %v526_v38 = vpop.permute.xlu1 %525 }
  0x87   : > { %v522_v39 = vpop.permute.xlu0 %521  ;;  %v547_v41 = vmax.bf16 %v526_v38, %v507_v7  ;;  %v1556_v7 = vsel %vm1554_vm3, %v1528_v6, 0 }
  0x88   : > { %v545_v44 = vmax.bf16 %v522_v39, %v505_v12 }
  0x8a   : > { %v528_v40 = vpop.permute.xlu1 %527 }
  0x8b   : > { %v548_v42 = vmax.bf16 %v528_v40, %v508_v13  ;;  %v524_v43 = vpop.permute.xlu0 %523 }
  0x8c   : > { %v546_v45 = vmax.bf16 %v524_v43, %v506_v14  ;;  %v3428_v14 = vld [vmem:[%s3989_s6] ss:$0 sm:$0xff] }
  0x8d   : > { %v2555_v46 = vcombine.low %v547_v41, %v548_v42 }
  0x8e   : > { %v532_v47 = vpop.permute.xlu1 %531  ;;  %v2554_v48 = vcombine.low %v545_v44, %v546_v45 }
  0x8f   : > { %v530_v49 = vpop.permute.xlu0 %529  ;;  %v550_v50 = vmax.bf16 %v532_v47, %v510_v20 }
  0x90   : > { %v549_v51 = vmax.bf16 %v530_v49, %v509_v21  ;;  %2714 = vmatprep.mubr.msk.bf16.mxu1 %vm574_vm1, %v2554_v48 }
  0x91   : > { %2715 = vmatmul.mubr.msk.bf16.vlgmr.msra.gmra.mrb[0].mxu1 %vm574_vm1, %v2555_v46 }
  0x92   : > { %v2556_v52 = vcombine.low %v549_v51, %v550_v50  ;;  %2723 = vmatpush3.bf16.msra.mxu1 %v3312_v19  ;;  %v536_v53 = vpop.permute.xlu1 %535 }
  0x93   : > { %v534_v54 = vpop.permute.xlu0 %533  ;;  %v552_v55 = vmax.bf16 %v536_v53, %v512_v26  ;;  %2925 = vmatprep.subr.msk.bf16.mxu1 %vm587_vm0, %v3290_v2 }
  0x94   : > { %v551_v56 = vmax.bf16 %v534_v54, %v511_v27  ;;  %2718 = vmatprep.mubr.msk.bf16.mxu1 %vm574_vm1, %v2556_v52 }
  0x96   : > { %v2557_v57 = vcombine.low %v551_v56, %v552_v55  ;;  %v920_v58 = vpop.permute.xlu1 %919 }
  0x97   : > { %v918_v59 = vpop.permute.xlu0 %917 }
  0x98   : > { %2734 = vmatprep.mubr.msk.bf16.mxu0 %vm574_vm1, %v918_v59 }
  0x99   : > { %2719 = vmatmul.mubr.msk.bf16.gmra.mrb[4].mxu1 %vm574_vm1, %v2557_v57  ;;  %2735 = vmatmul.mubr.msk.bf16.vlgmr.msra.gmra.mrb[0].mxu0 %vm574_vm1, %v920_v58 }
  0x9a   : > { %2753 = vmatpush3.bf16.msra.mxu0 %v3312_v19  ;;  %v1238_v60 = vpop.permute.xlu1 %1237  ;;  %2724 = vmatprep.mubr.msk.bf16.mxu1 %vm574_vm1, %v2564_v29 }
  0x9b   : > { %v1236_v61 = vpop.permute.xlu0 %1235  ;;  %2928 = vmatprep.subr.msk.bf16.mxu0 %vm1554_vm3, %v1528_v6 }
  0x9c   : > { %2754 = vmatprep.mubr.msk.bf16.mxu0 %vm574_vm1, %v1236_v61 }
  0x9e   : > { %v1240_v62 = vpop.permute.xlu1 %1239 }
  0x9f   : > { %v922_v0 = vpop.permute.xlu0 %921 }
  0xa1   : > { %2725 = vmatmul.mubr.msk.bf16.vlgmr.msra.gmra.mrb[8].mxu1 %vm574_vm1, %v2565_v28  ;;  %2755 = vmatmul.mubr.msk.bf16.vlgmr.msra.gmra.mrb[4].mxu0 %vm574_vm1, %v1238_v60 }
  0xa2   : > { %2865 = vmatpush3.bf16.msra.mxu1 %v3312_v19  ;;  %2728 = vmatprep.mubr.msk.bf16.mxu1 %vm574_vm1, %v2566_v33  ;;  %v1242_v63 = vpop.permute.xlu1 %1241 }
  0xa3   : > { %2758 = vmatprep.mubr.msk.bf16.mxu0 %vm574_vm1, %v1240_v62  ;;  %2926 = vmatprep.subr.msk.bf16.mxu1 %vm587_vm0, %v3290_v2  ;;  %v924_v1 = vpop.permute.xlu0 %923  ;;  %v3192_v2 = vmov 0.0  }
  0xa4   : > { %2775 = vmatpush3.bf16.msra.mxu0 %v1556_v7 }
  0xa5   : > { %2929 = vmatprep.subr.msk.bf16.mxu0 %vm1554_vm3, %v3413_v9 }
  0xa7   : > { %v1445_v3 = vpop.permute.xlu0 %1444 }
  0xa9   : > { %2729 = vmatmul.mubr.msk.bf16.gmra.mrb[12].mxu1 %vm574_vm1, %v2567_v35  ;;  %2759 = vmatmul.mubr.msk.bf16.gmra.mrb[8].mxu0 %vm574_vm1, %v1242_v63 }
  0xaa   : > { %2738 = vmatprep.mubr.msk.bf16.mxu1 %vm574_vm1, %v922_v0 }
  0xb1   : > { %2739 = vmatmul.mubr.msk.bf16.vlgmr.msra.gmra.mrb[16].mxu1 %vm574_vm1, %v924_v1 }
  0xb2   : > { %2743 = vmatpush3.bf16.msra.mxu1 %v3312_v19  ;;  %2744 = vmatprep.mubr.msk.bf16.mxu1 %vm574_vm1, %v3330_v31 }
  0xb3   : > { %2762 = vmatprep.subr.bf16.mxu1 %v3192_v2 }
  0xb9   : > { %2745 = vmatmul.mubr.msk.bf16.vlgmr.msra.gmra.mrb[20].mxu1 %vm574_vm1, %v3327_v30 }
  0xba   : > { %2748 = vmatprep.mubr.msk.bf16.mxu1 %vm574_vm1, %v3335_v32  ;;  %2763 = vmatpush3.bf16.msra.mxu1 %v3312_v19 }
  0xbb   : > { %2768 = vmatprep.subr.bf16.mxu1 %v3192_v2 }
  0xc1   : > { %2749 = vmatmul.mubr.msk.bf16.gmra.mrb[24].mxu1 %vm574_vm1, %v3341_v34 }
  0xc2   : > { %2764 = vmatprep.mubr.msk.bf16.mxu1 %vm3193_vm2, %v3192_v2 }
  0xc9   : > { %2765 = vmatmul.mubr.msk.bf16.vlgmr.msra.gmra.mrb[28].mxu1 %vm574_vm1, %v3351_v36 }
  0xca   : > { %2769 = vmatpush3.bf16.msra.mxu1 %v3312_v19  ;;  %2770 = vmatprep.mubr.msk.bf16.mxu1 %vm3193_vm2, %v3192_v2 }
  0xcb   : > { %2934 = vmatprep.subr.msk.bf16.mxu1 %vm1554_vm3, %v1529_v4 }
  0xd1   : > { %2771 = vmatmul.mubr.msk.bf16.vlgmr.msra.gmra.mrb[32].mxu1 %vm574_vm1, %v1445_v3 }
  0xd2   : > { %2835 = vmatpush3.bf16.msra.mxu1 %v2062_v5 }
  0xd3   : > { %2935 = vmatprep.subr.msk.bf16.mxu1 %vm1554_vm3, %v3406_v8 }
 0x164   : > { %v3417_v10 = vpop.f32.mrb[0].mxu1 }
 0x165   : > { %v3419_v11 = vpop.f32.mrb[1].mxu1 }
 0x166   : > { %v3421_v12 = vpop.f32.mrb[2].mxu1 }
 0x167   : > { %v3423_v13 = vpop.f32.mrb[3].mxu1 }
 0x16c   : > { %v3430_v15 = vpop.f32.mrb[4].mxu1  ;;  %v2736_v17 = vpop.f32.mrb[0].mxu0 }
 0x16d   : > { %v1004_v18 = vmul.f32 %v2736_v17, %v3428_v14  ;;  %v3438_v19 = vpop.f32.mrb[5].mxu1  ;;  %v971_v20 = vpop.f32.mrb[1].mxu0 }
 0x16e   : > { %v1002_v21 = vmul.f32 %v3428_v14, %v971_v20  ;;  %v3441_v22 = vpop.f32.mrb[6].mxu1  ;;  %v2737_v23 = vpop.f32.mrb[2].mxu0 }
 0x16f   : > { %v3444_v24 = vadd.f32 %v3435_v16, %v1004_v18  ;;  %v3446_v25 = vpop.f32.mrb[7].mxu1  ;;  %v974_v26 = vpop.f32.mrb[3].mxu0  ;;  %v1005_v28 = vmul.f32 %v2737_v23, %v3428_v14 }
 0x170   : > { %v3449_v27 = vadd.f32 %v3435_v16, %v1002_v21  ;;  %v1003_v32 = vmul.f32 %v3428_v14, %v974_v26 }
 0x171   : > { %v1020_v29 = vsub.f32 0.0, %v3444_v24  ;;  %v3455_v31 = vadd.f32 %v3435_v16, %v1005_v28 }
 0x172   : > { %v1018_v30 = vsub.f32 0.0, %v3449_v27  ;;  %v3459_v35 = vadd.f32 %v3435_v16, %v1003_v32 }
 0x173   : > { %v1030_v33 = vmul.f32 1.442695, %v1020_v29  ;;  %v1021_v40 = vsub.f32 0.0, %v3455_v31 }
 0x174   : > { %v1026_v34 = vmul.f32 1.442695, %v1018_v30  ;;  %v2726_v36 = vpop.f32.mrb[8].mxu1  ;;  %v2756_v38 = vpop.f32.mrb[4].mxu0  ;;  %v1019_v47 = vsub.f32 0.0, %v3459_v35 }
 0x175   : > { %v845_v37 = vmul.f32 %v2726_v36, %v3428_v14  ;;  %v806_v39 = vpop.f32.mrb[9].mxu1  ;;  %2975 = vpow2.f32 %v1030_v33  ;;  %v1289_v41 = vpop.f32.mrb[5].mxu0  ;;  %v1322_v44 = vmul.f32 %v2756_v38, %v3428_v14  ;;  %v1032_v51 = vmul.f32 1.442695, %v1021_v40 }
 0x176   : > { %v2727_v42 = vpop.f32.mrb[10].mxu1  ;;  %v2757_v45 = vpop.f32.mrb[6].mxu0  ;;  %2977 = vpow2.f32 %v1026_v34  ;;  %v843_v48 = vmul.f32 %v3428_v14, %v806_v39  ;;  %v1320_v52 = vmul.f32 %v3428_v14, %v1289_v41  ;;  %v1028_v54 = vmul.f32 1.442695, %v1019_v47 }
 0x177   : > { %v3464_v43 = vadd.f32 %v3435_v16, %v845_v37  ;;  %v809_v46 = vpop.f32.mrb[11].mxu1  ;;  %v1292_v49 = vpop.f32.mrb[7].mxu0  ;;  %v3472_v53 = vadd.f32 %v3435_v16, %v1322_v44  ;;  %v846_v57 = vmul.f32 %v2727_v42, %v3428_v14  ;;  %v1323_v61 = vmul.f32 %v2757_v45, %v3428_v14 }
 0x178   : > { %v3475_v55 = vadd.f32 %v3435_v16, %v843_v48  ;;  %v3478_v56 = vadd.f32 %v3435_v16, %v1320_v52  ;;  %2979 = vpow2.f32 %v1032_v51  ;;  %v844_v4 = vmul.f32 %v3428_v14, %v809_v46 }
 0x179   : > { %v867_v50 = vsub.f32 0.0, %v3464_v43  ;;  %v3483_v0 = vadd.f32 %v3435_v16, %v846_v57  ;;  %v1338_v3 = vsub.f32 0.0, %v3472_v53  ;;  %2981 = vpow2.f32 %v1028_v54 }
 0x17a   : > { %v865_v17 = vsub.f32 0.0, %v3475_v55  ;;  %v1336_v18 = vsub.f32 0.0, %v3478_v56  ;;  %v1321_v20 = vmul.f32 %v3428_v14, %v1292_v49  ;;  %v3493_v23 = vadd.f32 %v3435_v16, %v1323_v61 }
 0x17b   : > { %v877_v60 = vmul.f32 1.442695, %v867_v50  ;;  %v868_v28 = vsub.f32 0.0, %v3483_v0  ;;  %v1348_v32 = vmul.f32 1.442695, %v1338_v3  ;;  %v3498_v33 = vadd.f32 %v3435_v16, %v844_v4 }
 0x17c   : > { %v2730_v58 = vpop.f32.mrb[12].mxu1  ;;  %v2760_v59 = vpop.f32.mrb[8].mxu0  ;;  %v873_v34 = vmul.f32 1.442695, %v865_v17  ;;  %v1344_v36 = vmul.f32 1.442695, %v1336_v18  ;;  %v3501_v37 = vadd.f32 %v3435_v16, %v1321_v20 }
 0x17d   : > { %v822_v62 = vpop.f32.mrb[13].mxu1  ;;  %v1305_v63 = vpop.f32.mrb[9].mxu0  ;;  %2983 = vpow2.f32 %v877_v60  ;;  %v849_v29 = vmul.f32 %v2730_v58, %v3428_v14  ;;  %v1339_v39 = vsub.f32 0.0, %v3493_v23  ;;  %v1326_v40 = vmul.f32 %v2760_v59, %v3428_v14 }
 0x17e   : > { %v2731_v1 = vpop.f32.mrb[14].mxu1  ;;  %v2761_v2 = vpop.f32.mrb[10].mxu0  ;;  %v847_v41 = vmul.f32 %v3428_v14, %v822_v62  ;;  %v879_v44 = vmul.f32 1.442695, %v868_v28  ;;  %v866_v47 = vsub.f32 0.0, %v3498_v33  ;;  %v1337_v51 = vsub.f32 0.0, %v3501_v37 }
 0x17f   : > { %v825_v5 = vpop.f32.mrb[15].mxu1  ;;  %v3487_v6 = vpop.f32.mrb[11].mxu0  ;;  %v3511_v45 = vadd.f32 %v3435_v16, %v849_v29  ;;  %v3517_v48 = vadd.f32 %v3435_v16, %v1326_v40  ;;  %v1324_v54 = vmul.f32 %v3428_v14, %v1305_v63  ;;  %v1350_v58 = vmul.f32 1.442695, %v1339_v39 }
 0x180   : > { %v2976_v7 = vpop.eup %2975  ;;  %v3523_v52 = vadd.f32 %v3435_v16, %v847_v41  ;;  %v850_v62 = vmul.f32 %v2731_v1, %v3428_v14  ;;  %v1346_v63 = vmul.f32 1.442695, %v1337_v51  ;;  %v1327_v1 = vmul.f32 %v2761_v2, %v3428_v14 }
 0x181   : > { %v1044_v21 = vadd.f32 1.0, %v2976_v7  ;;  %v2978_v26 = vpop.eup %2977  ;;  %v871_v60 = vsub.f32 0.0, %v3511_v45  ;;  %v3528_v61 = vadd.f32 %v3435_v16, %v1324_v54  ;;  %v875_v7 = vmul.f32 1.442695, %v866_v47 }
 0x182   : > { %v1042_v30 = vadd.f32 1.0, %v2978_v26  ;;  %v2980_v50 = vpop.eup %2979  ;;  %v1342_v17 = vsub.f32 0.0, %v3517_v48  ;;  %v869_v20 = vsub.f32 0.0, %v3523_v52  ;;  %v3537_v29 = vadd.f32 %v3435_v16, %v850_v62 }
 0x183   : > { %2985 = vrcp.f32 %v1044_v21  ;;  %v1045_v57 = vadd.f32 1.0, %v2980_v50  ;;  %v2982_v59 = vpop.eup %2981  ;;  %v1340_v21 = vsub.f32 0.0, %v3528_v61  ;;  %v3547_v39 = vsel %vm1554_vm3, %v3406_v8, 0 }
 0x184   : > { %v3503_v38 = vpop.f32.mrb[16].mxu1  ;;  %2987 = vrcp.f32 %v1042_v30  ;;  %v1043_v4 = vadd.f32 1.0, %v2982_v59  ;;  %v848_v30 = vmul.f32 %v3428_v14, %v825_v5  ;;  %v1356_v41 = vmul.f32 1.442695, %v1342_v17 }
 0x185   : > { %v3508_v42 = vpop.f32.mrb[17].mxu1  ;;  %2989 = vpow2.f32 %v1348_v32  ;;  %v881_v50 = vmul.f32 1.442695, %v869_v20  ;;  %v1325_v51 = vmul.f32 %v3428_v14, %v3487_v6 }
 0x186   : > { %v3513_v46 = vpop.f32.mrb[18].mxu1  ;;  %2991 = vpow2.f32 %v873_v34  ;;  %v885_v34 = vmul.f32 1.442695, %v871_v60  ;;  %v3553_v2 = vadd.f32 %v3435_v16, %v848_v30 }
 0x187   : > { %v3519_v49 = vpop.f32.mrb[19].mxu1  ;;  %2993 = vpow2.f32 %v1344_v36  ;;  %v2984_v3 = vpop.eup %2983  ;;  %v3563_v62 = vadd.f32 %v3435_v16, %v1325_v51 }
 0x188   : > { %2995 = vpow2.f32 %v879_v44  ;;  %v891_v18 = vadd.f32 1.0, %v2984_v3  ;;  %v3550_v44 = vadd.f32 %v3435_v16, %v1327_v1  ;;  %v1009_v1 = vmul.f32 %v3513_v46, %v3428_v14 }
 0x189   : > { %2997 = vrcp.f32 %v1045_v57  ;;  %v1352_v57 = vmul.f32 1.442695, %v1340_v21 }
 0x18a   : > { %2999 = vrcp.f32 %v1043_v4  ;;  %v1343_v6 = vsub.f32 0.0, %v3550_v44 }
 0x18b   : > { %3001 = vrcp.f32 %v891_v18  ;;  %v1341_v18 = vsub.f32 0.0, %v3563_v62 }
 0x18c   : > { %v3534_v26 = vpop.f32.mrb[20].mxu1  ;;  %3003 = vpow2.f32 %v1350_v58  ;;  %v872_v58 = vsub.f32 0.0, %v3537_v29 }
 0x18d   : > { %v2986_v28 = vpop.eup %2985  ;;  %v3541_v32 = vpop.f32.mrb[21].mxu1  ;;  %3005 = vpow2.f32 %v875_v7 }
 0x18e   : > { %v3543_v36 = vpop.f32.mrb[22].mxu1  ;;  %v2988_v40 = vpop.eup %2987  ;;  %v1060_v47 = vmul.f32 %v2986_v28, %v3444_v24  ;;  %3007 = vpow2.f32 %v1346_v63  ;;  %v1008_v24 = vmul.f32 %v3503_v38, %v3428_v14  ;;  %v1006_v28 = vmul.f32 %v3428_v14, %v3508_v42 }
 0x18f   : > { %v3555_v5 = vpop.f32.mrb[23].mxu1  ;;  %v2990_v8 = vpop.eup %2989  ;;  %v1058_v54 = vmul.f32 %v2988_v40, %v3449_v27  ;;  %3009 = vpow2.f32 %v885_v34  ;;  %v870_v27 = vsub.f32 0.0, %v3553_v2  ;;  %v887_v40 = vmul.f32 1.442695, %v872_v58 }
 0x190   : > { %v2992_v59 = vpop.eup %2991  ;;  %v1362_v60 = vadd.f32 1.0, %v2990_v8  ;;  %3011 = vpow2.f32 %v1356_v41  ;;  %v3571_v63 = vadd.f32 %v3435_v16, %v1008_v24  ;;  %v3589_v42 = vadd.f32 %v3435_v16, %v1009_v1 }
 0x191   : > { %v2994_v3 = vpop.eup %2993  ;;  %v889_v4 = vadd.f32 1.0, %v2992_v59  ;;  %v1358_v59 = vmul.f32 1.442695, %v1343_v6  ;;  %v883_v58 = vmul.f32 1.442695, %v870_v27 }
 0x192   : > { %v2996_v7 = vpop.eup %2995  ;;  %3013 = vrcp.f32 %v1362_v60  ;;  %v1360_v17 = vadd.f32 1.0, %v2994_v3  ;;  %v1024_v41 = vsub.f32 0.0, %v3571_v63  ;;  %v3586_v60 = vadd.f32 %v3435_v16, %v1006_v28 }
 0x193   : > { %v2998_v21 = vpop.eup %2997  ;;  %3015 = vrcp.f32 %v889_v4  ;;  %v892_v38 = vadd.f32 1.0, %v2996_v7  ;;  %v1354_v6 = vmul.f32 1.442695, %v1341_v18 }
 0x194   : > { %v3573_v20 = vpop.f32.mrb[24].mxu1  ;;  %v1061_v34 = vmul.f32 %v2998_v21, %v3455_v31  ;;  %3017 = vrcp.f32 %v1360_v17  ;;  %v3000_v8 = vpop.eup %2999  ;;  %v1038_v17 = vmul.f32 1.442695, %v1024_v41  ;;  %v1167_v41 = vmul.f32 %v3428_v14, %v3541_v32 }
 0x195   : > { %v3579_v30 = vpop.f32.mrb[25].mxu1  ;;  %3019 = vrcp.f32 %v892_v38  ;;  %v3002_v24 = vpop.eup %3001  ;;  %v1059_v31 = vmul.f32 %v3000_v8, %v3459_v35  ;;  %v1022_v35 = vsub.f32 0.0, %v3586_v60  ;;  %v1170_v8 = vmul.f32 %v3543_v36, %v3428_v14 }
 0x196   : > { %v3583_v51 = vpop.f32.mrb[26].mxu1  ;;  %v3593_v3 = vpack.c.bf16 %v1061_v34, %v1060_v47  ;;  %3021 = vpow2.f32 %v881_v50  ;;  %v3004_v4 = vpop.eup %3003  ;;  %v3597_v7 = vmul.f32 %v3002_v24, %v3464_v43  ;;  %v1007_v47 = vmul.f32 %v3428_v14, %v3519_v49  ;;  %v3615_v49 = vld [vmem:[%s3991_s8 + $0xc] sm:$0x3] }
 0x197   : > { %v3591_v46 = vpop.f32.mrb[27].mxu1  ;;  %3023 = vpow2.f32 %v1352_v57  ;;  %v3006_v21 = vpop.eup %3005  ;;  %v3599_v38 = vpack.c.bf16 %v1059_v31, %v1058_v54  ;;  %v1363_v28 = vadd.f32 1.0, %v3004_v4  ;;  %v1025_v50 = vsub.f32 0.0, %v3589_v42 }
 0x198   : > { %3025 = vpow2.f32 %v887_v40  ;;  %v3008_v1 = vpop.eup %3007  ;;  %v890_v34 = vadd.f32 1.0, %v3006_v21  ;;  %v3606_v27 = vadd.f32 %v3435_v16, %v1007_v47  ;;  %v1169_v54 = vmul.f32 %v3534_v26, %v3428_v14 }
 0x199   : > { %3027 = vpow2.f32 %v1358_v59  ;;  %v3010_v43 = vpop.eup %3009  ;;  %v1361_v57 = vadd.f32 1.0, %v3008_v1  ;;  %2836 = vmatprep.mubr.msk.bf16.mxu1 %vm1541_vm4, %v3599_v38  ;;  %v1034_v21 = vmul.f32 1.442695, %v1022_v35  ;;  %v3629_v32 = vadd.f32 %v3435_v16, %v1167_v41 }
 0x19a   : > { %3029 = vrcp.f32 %v1363_v28  ;;  %v3012_v18 = vpop.eup %3011  ;;  %v895_v40 = vadd.f32 1.0, %v3010_v43  ;;  %2837 = vmatmul.mubr.msk.bf16.vlgmr.msra.gmra.mrb[36].mxu1 %vm1541_vm4, %v3593_v3  ;;  %v1023_v24 = vsub.f32 0.0, %v3606_v27  ;;  %v3625_v31 = vadd.f32 %v3435_v16, %v1169_v54 }
 0x19b   : > { %3031 = vrcp.f32 %v890_v34  ;;  %v1366_v59 = vadd.f32 1.0, %v3012_v18  ;;  %2845 = vmatpush3.bf16.msra.mxu1 %v3547_v39  ;;  %v3632_v36 = vadd.f32 %v3435_v16, %v1170_v8  ;;  %v1040_v1 = vmul.f32 1.442695, %v1025_v50 }
 0x19c   : > { %v3014_v26 = vpop.eup %3013  ;;  %3033 = vrcp.f32 %v1361_v57  ;;  %2936 = vmatprep.subr.msk.bf16.mxu1 %vm1554_vm3, %v3615_v49  ;;  %v1185_v34 = vsub.f32 0.0, %v3625_v31  ;;  %v1036_v57 = vmul.f32 1.442695, %v1023_v24 }
 0x19d   : > { %v3016_v4 = vpop.eup %3015  ;;  %3035 = vrcp.f32 %v895_v40  ;;  %v1378_v47 = vmul.f32 %v3014_v26, %v3472_v53  ;;  %v1183_v40 = vsub.f32 0.0, %v3629_v32  ;;  %v1168_v53 = vmul.f32 %v3428_v14, %v3555_v5 }
 0x19e   : > { %v3018_v28 = vpop.eup %3017  ;;  %3037 = vrcp.f32 %v1366_v59  ;;  %v3639_v43 = vmul.f32 %v3016_v4, %v3475_v55  ;;  %v1195_v8 = vmul.f32 1.442695, %v1185_v34  ;;  %v1186_v55 = vsub.f32 0.0, %v3632_v36 }
 0x19f   : > { %v3020_v39 = vpop.eup %3019  ;;  %v1376_v35 = vmul.f32 %v3018_v28, %v3478_v56  ;;  %3039 = vpow2.f32 %v883_v58  ;;  %v1173_v5 = vmul.f32 %v3573_v20, %v3428_v14  ;;  %v1191_v28 = vmul.f32 1.442695, %v1183_v40 }
 0x1a0   : > { %v3022_v54 = vpop.eup %3021  ;;  %v3643_v18 = vmul.f32 %v3020_v39, %v3483_v0  ;;  %3041 = vpow2.f32 %v1354_v6  ;;  %v3652_v0 = vadd.f32 %v3435_v16, %v1168_v53  ;;  %v1174_v34 = vmul.f32 %v3583_v51, %v3428_v14 }
 0x1a1   : > { %v3024_v50 = vpop.eup %3023  ;;  %v893_v41 = vadd.f32 1.0, %v3022_v54  ;;  %3043 = vpow2.f32 %v1038_v17  ;;  %v1171_v17 = vmul.f32 %v3428_v14, %v3579_v30  ;;  %v1197_v54 = vmul.f32 1.442695, %v1186_v55 }
 0x1a2   : > { %v3026_v26 = vpop.eup %3025  ;;  %v914_v56 = vpack.c.bf16 %v3643_v18, %v3597_v7  ;;  %v1364_v58 = vadd.f32 1.0, %v3024_v50  ;;  %3045 = vpow2.f32 %v1034_v21  ;;  %v3662_v53 = vadd.f32 %v3435_v16, %v1173_v5  ;;  %v1534_v18 = vld [vmem:[%s3991_s8 + $0x10] sm:$0x3] }
 0x1a3   : > { %v3028_v6 = vpop.eup %3027  ;;  %3047 = vrcp.f32 %v893_v41  ;;  %v896_v59 = vadd.f32 1.0, %v3026_v26  ;;  %v1184_v30 = vsub.f32 0.0, %v3652_v0  ;;  %v3669_v40 = vadd.f32 %v3435_v16, %v1171_v17 }
 0x1a4   : > { %v3030_v24 = vpop.eup %3029  ;;  %3049 = vrcp.f32 %v1364_v58  ;;  %v1367_v4 = vadd.f32 1.0, %v3028_v6  ;;  %v3675_v55 = vadd.f32 %v3435_v16, %v1174_v34  ;;  %v1642_v58 = vsel %vm1554_vm3, %v3413_v9, 0 }
 0x1a5   : > { %v3032_v21 = vpop.eup %3031  ;;  %v1379_v39 = vmul.f32 %v3030_v24, %v3493_v23  ;;  %3051 = vrcp.f32 %v896_v59  ;;  %v1193_v17 = vmul.f32 1.442695, %v1184_v30  ;;  %v1187_v24 = vsub.f32 0.0, %v3669_v40 }
 0x1a6   : > { %v3034_v50 = vpop.eup %3033  ;;  %v3665_v20 = vmul.f32 %v3032_v21, %v3498_v33  ;;  %3053 = vrcp.f32 %v1367_v4  ;;  %v1190_v9 = vsub.f32 0.0, %v3675_v55 }
 0x1a7   : > { %v3036_v41 = vpop.eup %3035  ;;  %v3671_v51 = vpack.c.bf16 %v1379_v39, %v1378_v47  ;;  %v1377_v23 = vmul.f32 %v3034_v50, %v3501_v37  ;;  %3055 = vpow2.f32 %v1040_v1  ;;  %v1189_v37 = vsub.f32 0.0, %v3662_v53 }
 0x1a8   : > { %v3038_v26 = vpop.eup %3037  ;;  %v913_v33 = vpack.c.bf16 %v3665_v20, %v3639_v43  ;;  %3057 = vpow2.f32 %v1036_v57  ;;  %v3194_v39 = vmov 0   ;;  %v1426_v43 = vpop.f32.mrb[28].mxu1 }
 0x1a9   : > { %v3040_v6 = vpop.eup %3039  ;;  %v1521_v59 = vunpack.c.l.b16 %v3671_v51  ;;  %v3682_v5 = vpack.c.bf16 %v1377_v23, %v1376_v35  ;;  %3059 = vpow2.f32 %v1195_v8  ;;  %v1172_v8 = vmul.f32 %v3428_v14, %v3591_v46  ;;  %v3704_v14 = vld [vmem:[%s3991_s8 + $0x8] sm:$0x3] }
 0x1aa   : > { %v3042_v47 = vpop.eup %3041  ;;  %v894_v1 = vadd.f32 1.0, %v3040_v6  ;;  %3061 = vpow2.f32 %v1191_v28  ;;  %v1203_v6 = vmul.f32 1.442695, %v1189_v37 }
 0x1ab   : > { %v3044_v4 = vpop.eup %3043  ;;  %v1520_v57 = vunpack.c.h.b16 %v3682_v5  ;;  %v1365_v34 = vadd.f32 1.0, %v3042_v47  ;;  %3063 = vpow2.f32 %v1197_v54  ;;  %v3692_v28 = vcombine.low %v3194_v39, %v3682_v5 }
 0x1ac   : > { %v3046_v21 = vpop.eup %3045  ;;  %3065 = vrcp.f32 %v894_v1  ;;  %v1048_v35 = vadd.f32 1.0, %v3044_v4  ;;  %v1199_v47 = vmul.f32 1.442695, %v1187_v24  ;;  %v3697_v1 = vadd.f32 %v3435_v16, %v1172_v8 }
 0x1ad   : > { %v3048_v50 = vpop.eup %3047  ;;  %v3694_v30 = vpack.c.b16 %v1521_v59, %v1520_v57  ;;  %3067 = vrcp.f32 %v1365_v34  ;;  %v1046_v23 = vadd.f32 1.0, %v3046_v21  ;;  %2776 = vmatprep.mubr.msk.bf16.mxu0 %vm1541_vm4, %v3692_v28  ;;  %v1205_v59 = vmul.f32 1.442695, %v1190_v9 }
 0x1ae   : > { %v3050_v54 = vpop.eup %3049  ;;  %3069 = vrcp.f32 %v1048_v35  ;;  %v3709_v24 = vmul.f32 %v3036_v41, %v3511_v45  ;;  %v1382_v57 = vmul.f32 %v3038_v26, %v3517_v48  ;;  %v1188_v9 = vsub.f32 0.0, %v3697_v1 }
 0x1af   : > { %v3052_v46 = vpop.eup %3051  ;;  %3071 = vrcp.f32 %v1046_v23  ;;  %2777 = vmatmul.mubr.msk.bf16.vlgmr.msra.gmra.mrb[12].mxu0 %vm1541_vm4, %v3694_v30 }
 0x1b0   : > { %v3054_v37 = vpop.eup %3053  ;;  %v3712_v16 = vmul.f32 %v3052_v46, %v3537_v29  ;;  %3073 = vpow2.f32 %v1193_v17  ;;  %2785 = vmatpush3.bf16.msra.mxu0 %v1642_v58  ;;  %v1201_v35 = vmul.f32 1.442695, %v1188_v9  ;;  %v3724_v46 = vmul.f32 %v3048_v50, %v3523_v52 }
 0x1b1   : > { %v3056_v4 = vpop.eup %3055  ;;  %v1383_v34 = vmul.f32 %v3054_v37, %v3550_v44  ;;  %3075 = vpow2.f32 %v1203_v6  ;;  %2930 = vmatprep.subr.msk.bf16.mxu0 %vm1554_vm3, %v3704_v14 }
 0x1b2   : > { %v3058_v21 = vpop.eup %3057  ;;  %v916_v45 = vpack.c.bf16 %v3712_v16, %v3709_v24  ;;  %v1049_v41 = vadd.f32 1.0, %v3056_v4  ;;  %3077 = vpow2.f32 %v1199_v47 }
 0x1b3   : > { %v3060_v29 = vpop.eup %3059  ;;  %v3721_v17 = vpack.c.bf16 %v1383_v34, %v1382_v57  ;;  %v1047_v58 = vadd.f32 1.0, %v3058_v21  ;;  %3079 = vpow2.f32 %v1205_v59  ;;  %v1380_v59 = vmul.f32 %v3050_v54, %v3528_v61 }
 0x1b4   : > { %v3062_v48 = vpop.eup %3061  ;;  %3081 = vrcp.f32 %v1049_v41  ;;  %v1209_v44 = vadd.f32 1.0, %v3060_v29  ;;  %v1522_v61 = vunpack.c.h.b16 %v3671_v51 }
 0x1b5   : > { %v3064_v26 = vpop.eup %3063  ;;  %3083 = vrcp.f32 %v1047_v58  ;;  %v1207_v37 = vadd.f32 1.0, %v3062_v48  ;;  %v1525_v52 = vunpack.c.l.b16 %v3721_v17 }
 0x1b6   : > { %v3066_v8 = vpop.eup %3065  ;;  %3085 = vrcp.f32 %v1209_v44  ;;  %v1210_v23 = vadd.f32 1.0, %v3064_v26 }
 0x1b7   : > { %v3068_v6 = vpop.eup %3067  ;;  %v3727_v47 = vmul.f32 %v3066_v8, %v3553_v2 }
 0x1b8   : > { %v3070_v4 = vpop.eup %3069  ;;  %v1381_v57 = vmul.f32 %v3068_v6, %v3563_v62  ;;  %3087 = vrcp.f32 %v1210_v23 }
 0x1b9   : > { %v3072_v34 = vpop.eup %3071  ;;  %v915_v9 = vpack.c.bf16 %v3727_v47, %v3724_v46  ;;  %3089 = vpow2.f32 %v1201_v35  ;;  %v1064_v6 = vmul.f32 %v3070_v4, %v3571_v63  ;;  %v1986_v46 = vsel %vm1554_vm3, %v1534_v18, 0 }
 0x1ba   : > { %v3074_v21 = vpop.eup %3073  ;;  %v3733_v41 = vpack.c.bf16 %v1381_v57, %v1380_v59  ;;  %3091 = vrcp.f32 %v1207_v37  ;;  %v1062_v57 = vmul.f32 %v3072_v34, %v3586_v60 }
 0x1bb   : > { %v3076_v50 = vpop.eup %3075  ;;  %v1208_v2 = vadd.f32 1.0, %v3074_v21 }
 0x1bc   : > { %v3078_v29 = vpop.eup %3077  ;;  %v1213_v58 = vadd.f32 1.0, %v3076_v50  ;;  %v1523_v62 = vunpack.c.l.b16 %v3733_v41  ;;  %v1524_v54 = vunpack.c.h.b16 %v3733_v41 }
 0x1bd   : > { %v3080_v48 = vpop.eup %3079  ;;  %3093 = vrcp.f32 %v1208_v2  ;;  %v1211_v50 = vadd.f32 1.0, %v3078_v29 }
 0x1be   : > { %v3082_v44 = vpop.eup %3081  ;;  %3095 = vrcp.f32 %v1213_v58  ;;  %v1214_v26 = vadd.f32 1.0, %v3080_v48  ;;  %v1539_v35 = vpack.c.b16 %v1523_v62, %v1522_v61  ;;  %v1540_v8 = vpack.c.b16 %v1525_v52, %v1524_v54 }
 0x1bf   : > { %v3084_v23 = vpop.eup %3083  ;;  %v1065_v37 = vmul.f32 %v3082_v44, %v3589_v42 }
 0x1c0   : > { %v3086_v59 = vpop.eup %3085  ;;  %v1063_v21 = vmul.f32 %v3084_v23, %v3606_v27  ;;  %3097 = vrcp.f32 %v1214_v26  ;;  %2780 = vmatprep.mubr.msk.bf16.mxu0 %vm1541_vm4, %v1539_v35 }
 0x1c1   : > { %v3744_v2 = vpack.c.bf16 %v1065_v37, %v1064_v6  ;;  %2781 = vmatmul.mubr.msk.bf16.gmra.mrb[16].mxu0 %vm1541_vm4, %v1540_v8  ;;  %v1225_v63 = vmul.f32 %v3086_v59, %v3625_v31  ;;  %3099 = vrcp.f32 %v1211_v50 }
 0x1c2   : > { %v3088_v58 = vpop.eup %3087  ;;  %v3747_v52 = vpack.c.bf16 %v1063_v21, %v1062_v57 }
 0x1c3   : > { %v3090_v61 = vpop.eup %3089  ;;  %v1226_v42 = vmul.f32 %v3088_v58, %v3632_v36 }
 0x1c4   : > { %v1212_v60 = vadd.f32 1.0, %v3090_v61  ;;  %2840 = vmatprep.mubr.msk.bf16.mxu1 %vm1541_vm4, %v3747_v52  ;;  %v3092_v27 = vpop.eup %3091 }
 0x1c5   : > { %v3753_v4 = vpack.c.bf16 %v1226_v42, %v1225_v63  ;;  %2841 = vmatmul.mubr.msk.bf16.gmra.mrb[40].mxu1 %vm1541_vm4, %v3744_v2  ;;  %v1223_v31 = vmul.f32 %v3092_v27, %v3629_v32 }
 0x1c6   : > { %3101 = vrcp.f32 %v1212_v60  ;;  %2846 = vmatprep.mubr.msk.bf16.mxu1 %vm1541_vm4, %v3692_v28  ;;  %v2198_v28 = vsel %vm1554_vm3, %v3615_v49, 0 }
 0x1c7   : > { %v3094_v34 = vpop.eup %3093  ;;  %v1510_v54 = vunpack.c.l.b16 %v3753_v4 }
 0x1c8   : > { %v3096_v29 = vpop.eup %3095  ;;  %v1224_v36 = vmul.f32 %v3094_v34, %v3652_v0 }
 0x1c9   : > { %v1229_v44 = vmul.f32 %v3096_v29, %v3662_v53  ;;  %v1722_v53 = vsel %vm1554_vm3, %v3704_v14, 0  ;;  %v1511_v14 = vunpack.c.h.b16 %v3753_v4 }
 0x1ca   : > { %v3098_v62 = vpop.eup %3097  ;;  %v1231_v48 = vpack.c.bf16 %v1224_v36, %v1223_v31 }
 0x1cb   : > { %v1230_v26 = vmul.f32 %v3098_v62, %v3675_v55  ;;  %v3100_v32 = vpop.eup %3099  ;;  %v1531_v55 = vld [vmem:[%s3991_s8 + $0xa] sm:$0x3] }
 0x1cc   : > { %v1509_v23 = vunpack.c.h.b16 %v1231_v48  ;;  %v2598_v6 = vcombine.low %v3194_v39, %v1231_v48  ;;  %v1227_v49 = vmul.f32 %v3100_v32, %v3669_v40  ;;  %v1810_v40 = vsel %vm1554_vm3, %v1531_v55, 0 }
 0x1cd   : > { %v1234_v37 = vpack.c.bf16 %v1230_v26, %v1229_v44  ;;  %2847 = vmatmul.mubr.msk.bf16.vlgmr.msra.gmra.mrb[36].mxu1 %vm1541_vm4, %v3694_v30 }
 0x1ce   : > { %v1626_v0 = vpack.c.b16 %v1510_v54, %v1509_v23  ;;  %2786 = vmatprep.mubr.msk.bf16.mxu0 %vm1541_vm4, %v2598_v6  ;;  %2850 = vmatprep.mubr.msk.bf16.mxu1 %vm1541_vm4, %v1539_v35 }
 0x1cf   : > { %2855 = vmatpush3.bf16.msra.mxu1 %v2198_v28  ;;  %v1514_v59 = vunpack.c.l.b16 %v1234_v37 }
 0x1d0   : > { %v3102_v39 = vpop.eup %3101  ;;  %2787 = vmatmul.mubr.msk.bf16.vlgmr.msra.gmra.mrb[12].mxu0 %vm1541_vm4, %v1626_v0 }
 0x1d1   : > { %v1228_v30 = vmul.f32 %v3102_v39, %v3697_v1  ;;  %2795 = vmatpush3.bf16.msra.mxu0 %v1722_v53  ;;  %v1533_v1 = vld [vmem:[%s3991_s8 + $0xe] sm:$0x3] }
 0x1d2   : > { %2931 = vmatprep.subr.msk.bf16.mxu0 %vm1554_vm3, %v1531_v55  ;;  %v1898_v7 = vsel %vm1554_vm3, %v1533_v1, 0  ;;  %v2632_v55 = vld [vmem:[%s3993_s10] ss:$0 sm:$0xff] }
 0x1d3   : > { %v1233_v35 = vpack.c.bf16 %v1228_v30, %v1227_v49 }
 0x1d5   : > { %2851 = vmatmul.mubr.msk.bf16.gmra.mrb[40].mxu1 %vm1541_vm4, %v1540_v8  ;;  %v1512_v57 = vunpack.c.l.b16 %v1233_v35  ;;  %v1513_v21 = vunpack.c.h.b16 %v1233_v35 }
 0x1d6   : > { %2856 = vmatprep.mubr.msk.bf16.mxu1 %vm1541_vm4, %v3682_v5 }
 0x1d7   : > { %v1627_v50 = vpack.c.b16 %v1512_v57, %v1511_v14  ;;  %v1628_v58 = vpack.c.b16 %v1514_v59, %v1513_v21 }
 0x1d9   : > { %2790 = vmatprep.mubr.msk.bf16.mxu0 %vm1541_vm4, %v1627_v50 }
 0x1da   : > { %2791 = vmatmul.mubr.msk.bf16.gmra.mrb[16].mxu0 %vm1541_vm4, %v1628_v58 }
 0x1db   : > { %2796 = vmatprep.mubr.msk.bf16.mxu0 %vm1541_vm4, %v913_v33 }
 0x1dd   : > { %2857 = vmatmul.mubr.msk.bf16.vlgmr.msra.gmra.mrb[36].mxu1 %vm1541_vm4, %v3671_v51 }
 0x1de   : > { %2860 = vmatprep.mubr.msk.bf16.mxu1 %vm1541_vm4, %v3733_v41 }
 0x1e2   : > { %2797 = vmatmul.mubr.msk.bf16.vlgmr.msra.gmra.mrb[12].mxu0 %vm1541_vm4, %v914_v56  ;;  %v2766_v56 = vpop.f32.mrb[29].mxu1 }
 0x1e3   : > { %2805 = vmatpush3.bf16.msra.mxu0 %v1810_v40  ;;  %2800 = vmatprep.mubr.msk.bf16.mxu0 %vm1541_vm4, %v915_v9  ;;  %v1429_v20 = vpop.f32.mrb[30].mxu1 }
 0x1e4   : > { %2932 = vmatprep.subr.msk.bf16.mxu0 %vm1554_vm3, %v1533_v1  ;;  %v2767_v33 = vpop.f32.mrb[31].mxu1 }
 0x1e5   : > { %2861 = vmatmul.mubr.msk.bf16.gmra.mrb[40].mxu1 %vm1541_vm4, %v3721_v17 }
 0x1ea   : > { %2801 = vmatmul.mubr.msk.bf16.gmra.mrb[16].mxu0 %vm1541_vm4, %v916_v45 }
 0x1eb   : > { %2806 = vmatprep.mubr.msk.bf16.mxu0 %vm1541_vm4, %v3599_v38  ;;  %v1483_v38 = vpop.f32.mrb[32].mxu1 }
 0x1ec   : > { %v2772_v24 = vpop.f32.mrb[33].mxu1 }
 0x1ed   : > { %v1486_v16 = vpop.f32.mrb[34].mxu1 }
 0x1ee   : > { %v2773_v45 = vpop.f32.mrb[35].mxu1 }
 0x1f2   : > { %2807 = vmatmul.mubr.msk.bf16.vlgmr.msra.gmra.mrb[12].mxu0 %vm1541_vm4, %v3593_v3  ;;  %v2281_v3 = vlaneseq }
 0x1f3   : > { %2815 = vmatpush3.bf16.msra.mxu0 %v1898_v7  ;;  %2810 = vmatprep.mubr.msk.bf16.mxu0 %vm1541_vm4, %v3747_v52 }
 0x1f4   : > { %2933 = vmatprep.subr.msk.bf16.mxu0 %vm1554_vm3, %v1534_v18  ;;  %v3840_v47 = vshrl.u32 %v2281_v3, 7 }
 0x1f6   : > { %vm2283_vm5 = vcmp.lt.s32.totalorder %v3840_v47, 1  ;;  %vm2292_vm6 = vcmp.eq.s32.totalorder %v3840_v47, 0 }
 0x1fa   : > { %2811 = vmatmul.mubr.msk.bf16.gmra.mrb[16].mxu0 %vm1541_vm4, %v3744_v2 }
 0x1fb   : > { %2816 = vmatprep.mubr.msk.bf16.mxu0 %vm1541_vm4, %v1231_v48 }
 0x202   : > { %2817 = vmatmul.mubr.msk.bf16.vlgmr.msra.gmra.mrb[12].mxu0 %vm1541_vm4, %v3753_v4 }
 0x203   : > { %2825 = vmatpush3.bf16.msra.mxu0 %v1986_v46  ;;  %2820 = vmatprep.mubr.msk.bf16.mxu0 %vm1541_vm4, %v1233_v35 }
 0x20a   : > { %2821 = vmatmul.mubr.msk.bf16.gmra.mrb[16].mxu0 %vm1541_vm4, %v1234_v37  ;;  %v2631_v37 = vld [vmem:[%s3992_s9] ss:$0 sm:$0xff] }
 0x20b   : > { %2826 = vmatprep.mubr.msk.bf16.mxu0 %vm1541_vm4, %v3682_v5 }
 0x212   : > { %2827 = vmatmul.mubr.msk.bf16.vlgmr.msra.gmra.mrb[12].mxu0 %vm1541_vm4, %v3671_v51 }
 0x213   : > { %2830 = vmatprep.mubr.msk.bf16.mxu0 %vm1541_vm4, %v3733_v41 }
 0x21a   : > { %2831 = vmatmul.mubr.msk.bf16.gmra.mrb[16].mxu0 %vm1541_vm4, %v3721_v17 }
 0x2b0   : > { %v2858_v9 = vpop.f32.mrb[36].mxu1 }
 0x2b1   : > { %v2234_v8 = vpop.f32.mrb[37].mxu1  ;;  %v2275_v52 = vrot.slane %v2858_v9, 7 }
 0x2b2   : > { %v2859_v2 = vpop.f32.mrb[38].mxu1  ;;  %v2273_v63 = vrot.slane %v2234_v8, 7 }
 0x2b3   : > { %v2276_v61 = vrot.slane %v2859_v2, 7  ;;  %v2237_v5 = vpop.f32.mrb[39].mxu1 }
 0x2b4   : > { %v2274_v42 = vrot.slane %v2237_v5, 7 }
 0x2b5   : > { %v2288_v51 = vsel %vm2283_vm5, %v2275_v52, %v2276_v61 }
 0x2b6   : > { %v2289_v41 = vsel %vm2283_vm5, %v2274_v42, %v2275_v52  ;;  %v2290_v17 = vsel %vm2283_vm5, %v2273_v63, %v2274_v42  ;;  %v2296_v30 = vsel %vm2292_vm6, 0.0, %v2288_v51 }
 0x2b7   : > { %v2295_v28 = vsel %vm2292_vm6, 0.0, %v2289_v41  ;;  %v2294_v57 = vsel %vm2292_vm6, 0.0, %v2290_v17 }
 0x2b8   : > { %v2862_v60 = vpop.f32.mrb[40].mxu1 }
 0x2b9   : > { %v2250_v27 = vpop.f32.mrb[41].mxu1  ;;  %v2279_v29 = vrot.slane %v2862_v60, 7 }
 0x2ba   : > { %v2277_v4 = vrot.slane %v2250_v27, 7  ;;  %v2863_v34 = vpop.f32.mrb[42].mxu1 }
 0x2bb   : > { %v2280_v31 = vrot.slane %v2863_v34, 7  ;;  %v2253_v36 = vpop.f32.mrb[43].mxu1 }
 0x2bc   : > { %v2278_v62 = vrot.slane %v2253_v36, 7  ;;  %v2287_v54 = vsel %vm2283_vm5, %v2276_v61, %v2277_v4 }
 0x2bd   : > { %v2291_v48 = vsel %vm2283_vm5, %v2280_v31, %v2273_v63  ;;  %v2284_v44 = vsel %vm2283_vm5, %v2279_v29, %v2280_v31  ;;  %v2297_v24 = vsel %vm2292_vm6, 0.0, %v2287_v54 }
 0x2be   : > { %v2285_v26 = vsel %vm2283_vm5, %v2278_v62, %v2279_v29  ;;  %v2286_v23 = vsel %vm2283_vm5, %v2277_v4, %v2278_v62  ;;  %v2293_v53 = vsel %vm2292_vm6, 0.0, %v2291_v48  ;;  %v2300_v9 = vsel %vm2292_vm6, 0.0, %v2284_v44 }
 0x2bf   : > { %v2299_v38 = vsel %vm2292_vm6, 0.0, %v2285_v26  ;;  %v2298_v5 = vsel %vm2292_vm6, 0.0, %v2286_v23 }
 0x2e5   : > { %v2828_v6 = vpop.f32.mrb[12].mxu0 }
 0x2e6   : > { %v2303_v32 = vadd.f32 %v2828_v6, %v2295_v28  ;;  %v2022_v0 = vpop.f32.mrb[13].mxu0 }
 0x2e7   : > { %v2301_v39 = vadd.f32 %v2293_v53, %v2022_v0  ;;  %v2829_v49 = vpop.f32.mrb[14].mxu0 }
 0x2e8   : > { %v2318_v59 = vmul.f32 %v2631_v37, %v2303_v32  ;;  %v2304_v35 = vadd.f32 %v2829_v49, %v2296_v30  ;;  %v2025_v14 = vpop.f32.mrb[15].mxu0 }
 0x2e9   : > { %v2316_v21 = vmul.f32 %v2631_v37, %v2301_v39  ;;  %v2302_v50 = vadd.f32 %v2294_v57, %v2025_v14 }
 0x2ea   : > { %v3874_v58 = vadd.f32 %v2632_v55, %v2318_v59  ;;  %v2319_v40 = vmul.f32 %v2631_v37, %v2304_v35 }
 0x2eb   : > { %v3876_v1 = vadd.f32 %v2632_v55, %v2316_v21  ;;  %v2317_v7 = vmul.f32 %v2631_v37, %v2302_v50 }
 0x2ec   : > { %v2341_v43 = vsub.f32 0.0, %v3874_v58  ;;  %v3879_v18 = vadd.f32 %v2632_v55, %v2319_v40 }
 0x2ed   : > { %v2339_v56 = vsub.f32 0.0, %v3876_v1  ;;  %v3882_v20 = vadd.f32 %v2632_v55, %v2317_v7  ;;  %v2832_v33 = vpop.f32.mrb[16].mxu0 }
 0x2ee   : > { %v2351_v16 = vmul.f32 1.442695, %v2341_v43  ;;  %v2342_v45 = vsub.f32 0.0, %v3879_v18  ;;  %v2307_v46 = vadd.f32 %v2832_v33, %v2299_v38  ;;  %v2038_v3 = vpop.f32.mrb[17].mxu0 }
 0x2ef   : > { %v2347_v8 = vmul.f32 1.442695, %v2339_v56  ;;  %v2340_v2 = vsub.f32 0.0, %v3882_v20  ;;  %v2305_v52 = vadd.f32 %v2297_v24, %v2038_v3  ;;  %v2833_v61 = vpop.f32.mrb[18].mxu0 }
 0x2f0   : > { %3103 = vpow2.f32 %v2351_v16  ;;  %v2353_v63 = vmul.f32 1.442695, %v2342_v45  ;;  %v2322_v42 = vmul.f32 %v2631_v37, %v2307_v46  ;;  %v2308_v51 = vadd.f32 %v2833_v61, %v2300_v9  ;;  %v2041_v41 = vpop.f32.mrb[19].mxu0 }
 0x2f1   : > { %3105 = vpow2.f32 %v2347_v8  ;;  %v2349_v17 = vmul.f32 1.442695, %v2340_v2  ;;  %v2320_v60 = vmul.f32 %v2631_v37, %v2305_v52  ;;  %v2306_v27 = vadd.f32 %v2298_v5, %v2041_v41  ;;  %v2563_v5 = vld [vmem:[%s3987_s4] ss:$0 sm:$0xff] }
 0x2f2   : > { %3107 = vpow2.f32 %v2353_v63  ;;  %v3894_v4 = vadd.f32 %v2632_v55, %v2322_v42  ;;  %v2323_v34 = vmul.f32 %v2631_v37, %v2308_v51 }
 0x2f3   : > { %3109 = vpow2.f32 %v2349_v17  ;;  %v2335_v29 = vadd.f32 %v2632_v55, %v2320_v60  ;;  %v2321_v31 = vmul.f32 %v2631_v37, %v2306_v27 }
 0x2f4   : > { %v2345_v36 = vsub.f32 0.0, %v3894_v4  ;;  %v2338_v47 = vadd.f32 %v2632_v55, %v2323_v34 }
 0x2f5   : > { %v2343_v62 = vsub.f32 0.0, %v2335_v29  ;;  %v2336_v54 = vadd.f32 %v2632_v55, %v2321_v31 }
 0x2f6   : > { %v2359_v48 = vmul.f32 1.442695, %v2345_v36  ;;  %v2346_v44 = vsub.f32 0.0, %v2338_v47 }
 0x2f7   : > { %v2355_v26 = vmul.f32 1.442695, %v2343_v62  ;;  %v2344_v23 = vsub.f32 0.0, %v2336_v54 }
 0x2f8   : > { %3111 = vpow2.f32 %v2359_v48  ;;  %v2361_v6 = vmul.f32 1.442695, %v2346_v44 }
 0x2f9   : > { %3113 = vpow2.f32 %v2355_v26  ;;  %v2357_v28 = vmul.f32 1.442695, %v2344_v23 }
 0x2fa   : > { %v3104_v32 = vpop.eup %3103  ;;  %3115 = vpow2.f32 %v2361_v6 }
 0x2fb   : > { %v3106_v0 = vpop.eup %3105  ;;  %v2365_v53 = vadd.f32 1.0, %v3104_v32  ;;  %3117 = vpow2.f32 %v2357_v28 }
 0x2fc   : > { %v3108_v39 = vpop.eup %3107  ;;  %v2363_v37 = vadd.f32 1.0, %v3106_v0 }
 0x2fd   : > { %v3110_v49 = vpop.eup %3109  ;;  %3119 = vrcp.f32 %v2365_v53  ;;  %v2366_v30 = vadd.f32 1.0, %v3108_v39 }
 0x2fe   : > { %3121 = vrcp.f32 %v2363_v37  ;;  %v2364_v55 = vadd.f32 1.0, %v3110_v49 }
 0x2ff   : > { %3123 = vrcp.f32 %v2366_v30 }
 0x300   : > { %3125 = vrcp.f32 %v2364_v55 }
 0x302   : > { %v3112_v59 = vpop.eup %3111 }
 0x303   : > { %v3114_v35 = vpop.eup %3113  ;;  %v2369_v14 = vadd.f32 1.0, %v3112_v59 }
 0x304   : > { %v3116_v57 = vpop.eup %3115  ;;  %v2367_v21 = vadd.f32 1.0, %v3114_v35 }
 0x305   : > { %v3118_v50 = vpop.eup %3117  ;;  %v2370_v40 = vadd.f32 1.0, %v3116_v57 }
 0x306   : > { %3127 = vrcp.f32 %v2367_v21  ;;  %v2368_v7 = vadd.f32 1.0, %v3118_v50 }
 0x307   : > { %v3120_v43 = vpop.eup %3119  ;;  %3129 = vrcp.f32 %v2369_v14 }
 0x308   : > { %v3122_v56 = vpop.eup %3121  ;;  %3131 = vrcp.f32 %v2368_v7  ;;  %v2381_v33 = vmul.f32 %v3120_v43, %v3874_v58 }
 0x309   : > { %v3124_v38 = vpop.eup %3123  ;;  %3133 = vrcp.f32 %v2370_v40  ;;  %v2379_v45 = vmul.f32 %v3122_v56, %v3876_v1  ;;  %v2562_v1 = vld [vmem:[%s3986_s3] ss:$0 sm:$0xff] }
 0x30a   : > { %2399 = vrot.lane.b32.xlu1 %v2381_v33, %s3195_s29  ;;  %v2382_v24 = vmul.f32 %v3124_v38, %v3879_v18  ;;  %v3126_v16 = vpop.eup %3125  ;;  %v666_v63 = vmul.f32 %v3421_v12, %v2562_v1  ;;  %v663_v51 = vmul.f32 %v2562_v1, %v3419_v11  ;;  %v664_v17 = vmul.f32 %v2562_v1, %v3423_v13 }
 0x30b   : > { %v2380_v46 = vmul.f32 %v3126_v16, %v3882_v20  ;;  %v665_v20 = vmul.f32 %v3417_v10, %v2562_v1  ;;  %v669_v11 = vmul.f32 %v3430_v15, %v2562_v1  ;;  %v670_v62 = vmul.f32 %v3441_v22, %v2562_v1 }
 0x30c   : > { %2401 = vrot.lane.b32.xlu0 %v2382_v24, %s3195_s29  ;;  %v3911_v41 = vadd.f32 %v2563_v5, %v666_v63  ;;  %v3914_v27 = vadd.f32 %v2563_v5, %v663_v51  ;;  %v3918_v34 = vadd.f32 %v2563_v5, %v664_v17 }
 0x30d   : > { %v680_v42 = vadd.f32 %v2563_v5, %v665_v20  ;;  %v3929_v48 = vadd.f32 %v2563_v5, %v669_v11  ;;  %v3932_v26 = vadd.f32 %v2563_v5, %v670_v62 }
 0x30e   : > { %2395 = vrot.lane.b32.xlu1 %v2379_v45, %s3195_s29  ;;  %v689_v10 = vsub.f32 0.0, %v3911_v41  ;;  %v686_v12 = vsub.f32 0.0, %v3914_v27  ;;  %v687_v13 = vsub.f32 0.0, %v3918_v34 }
 0x30f   : > { %v688_v60 = vsub.f32 0.0, %v680_v42  ;;  %v692_v23 = vsub.f32 0.0, %v3929_v48  ;;  %v693_v22 = vsub.f32 0.0, %v3932_v26 }
 0x310   : > { %v3128_v3 = vpop.eup %3127  ;;  %2397 = vrot.lane.b32.xlu0 %v2380_v46, %s3195_s29  ;;  %v696_v44 = vmul.f32 1.442695, %v687_v13 }
 0x311   : > { %v3130_v9 = vpop.eup %3129  ;;  %v2383_v8 = vmul.f32 %v3128_v3, %v2335_v29  ;;  %v668_v29 = vmul.f32 %v2562_v1, %v3446_v25  ;;  %v698_v31 = vmul.f32 1.442695, %v688_v60  ;;  %v706_v32 = vmul.f32 1.442695, %v692_v23 }
 0x312   : > { %v3132_v2 = vpop.eup %3131  ;;  %v2385_v61 = vmul.f32 %v3130_v9, %v3894_v4  ;;  %v667_v4 = vmul.f32 %v2562_v1, %v3438_v19  ;;  %v694_v19 = vmul.f32 1.442695, %v686_v12  ;;  %v708_v53 = vmul.f32 1.442695, %v693_v22 }
 0x313   : > { %2403 = vrot.lane.b32.xlu1 %v2383_v8, %s3195_s29  ;;  %v2384_v58 = vmul.f32 %v3132_v2, %v2336_v54  ;;  %v3134_v52 = vpop.eup %3133  ;;  %v3927_v54 = vadd.f32 %v2563_v5, %v668_v29  ;;  %3135 = vpow2.f32 %v698_v31 }
 0x314   : > { %v2386_v18 = vmul.f32 %v3134_v52, %v2338_v47  ;;  %v3923_v36 = vadd.f32 %v2563_v5, %v667_v4  ;;  %v700_v47 = vmul.f32 1.442695, %v689_v10 }
 0x315   : > { %2405 = vrot.lane.b32.xlu0 %v2384_v58, %s3195_s29  ;;  %v691_v15 = vsub.f32 0.0, %v3927_v54 }
 0x316   : > { %v690_v25 = vsub.f32 0.0, %v3923_v36  ;;  %3137 = vpow2.f32 %v700_v47 }
 0x317   : > { %2407 = vrot.lane.b32.xlu1 %v2385_v61, %s3195_s29  ;;  %3139 = vpow2.f32 %v694_v19  ;;  %v704_v28 = vmul.f32 1.442695, %v691_v15 }
 0x318   : > { %v702_v6 = vmul.f32 1.442695, %v690_v25  ;;  %3141 = vpow2.f32 %v696_v44 }
 0x319   : > { %2409 = vrot.lane.b32.xlu0 %v2386_v18, %s3195_s29 }
 0x31a   : > { %3143 = vpow2.f32 %v702_v6 }
 0x31b   : > { %3145 = vpow2.f32 %v704_v28 }
 0x31c   : > { %3147 = vpow2.f32 %v706_v32 }
 0x31d   : > { %v3136_v0 = vpop.eup %3135  ;;  %3149 = vpow2.f32 %v708_v53 }
 0x31e   : > { %v712_v37 = vadd.f32 1.0, %v3136_v0 }
 0x320   : > { %v3138_v39 = vpop.eup %3137  ;;  %3151 = vrcp.f32 %v712_v37 }
 0x321   : > { %v3140_v49 = vpop.eup %3139  ;;  %v713_v30 = vadd.f32 1.0, %v3138_v39 }
 0x322   : > { %v3142_v55 = vpop.eup %3141  ;;  %v710_v59 = vadd.f32 1.0, %v3140_v49 }
 0x323   : > { %3153 = vrcp.f32 %v713_v30  ;;  %v711_v14 = vadd.f32 1.0, %v3142_v55 }
 0x324   : > { %v3144_v35 = vpop.eup %3143  ;;  %3155 = vrcp.f32 %v710_v59 }
 0x325   : > { %v3146_v57 = vpop.eup %3145  ;;  %v714_v21 = vadd.f32 1.0, %v3144_v35  ;;  %3157 = vrcp.f32 %v711_v14 }
 0x326   : > { %v3148_v50 = vpop.eup %3147  ;;  %v715_v40 = vadd.f32 1.0, %v3146_v57 }
 0x327   : > { %v3150_v7 = vpop.eup %3149  ;;  %v716_v43 = vadd.f32 1.0, %v3148_v50  ;;  %3159 = vrcp.f32 %v714_v21 }
 0x328   : > { %v717_v33 = vadd.f32 1.0, %v3150_v7  ;;  %3161 = vrcp.f32 %v715_v40 }
 0x329   : > { %3163 = vrcp.f32 %v716_v43 }
 0x32a   : > { %v3152_v56 = vpop.eup %3151  ;;  %3165 = vrcp.f32 %v717_v33 }
 0x32b   : > { %v728_v24 = vmul.f32 %v3152_v56, %v680_v42 }
 0x32d   : > { %v3154_v38 = vpop.eup %3153 }
 0x32e   : > { %v3156_v16 = vpop.eup %3155  ;;  %v729_v46 = vmul.f32 %v3154_v38, %v3911_v41 }
 0x32f   : > { %v3158_v9 = vpop.eup %3157  ;;  %v726_v2 = vmul.f32 %v3156_v16, %v3914_v27 }
 0x330   : > { %v727_v18 = vmul.f32 %v3158_v9, %v3918_v34 }
 0x331   : > { %v3160_v61 = vpop.eup %3159 }
 0x332   : > { %v3162_v5 = vpop.eup %3161  ;;  %v730_v42 = vmul.f32 %v3160_v61, %v3923_v36 }
 0x333   : > { %v3164_v51 = vpop.eup %3163  ;;  %v731_v17 = vmul.f32 %v3162_v5, %v3927_v54 }
 0x334   : > { %v3166_v27 = vpop.eup %3165  ;;  %v732_v10 = vmul.f32 %v3164_v51, %v3929_v48 }
 0x335   : > { %v733_v31 = vmul.f32 %v3166_v27, %v3932_v26 }
 0x37c   : > { %v2400_v45 = vpop.permute.xlu1 %2399 }
 0x37d   : > { %v2421_v3 = vsel %vm1541_vm4, %v728_v24, %v2400_v45 }
 0x37e   : > { %2429 = vst.msk [vmem:[%s3941_s17 + $0x10] sm:$0xff] %vm574_vm1, %v2421_v3  ;;  %v2402_v8 = vpop.permute.xlu0 %2401 }
 0x37f   : > { %v2422_v58 = vsel %vm1541_vm4, %v729_v46, %v2402_v8 }
 0x380   : > { %2430 = vst.msk [vmem:[%s3941_s17 + $0x18] sm:$0xff] %vm574_vm1, %v2422_v58  ;;  %v2396_v52 = vpop.permute.xlu1 %2395 }
 0x381   : > { %v2419_v1 = vsel %vm1541_vm4, %v726_v2, %v2396_v52 }
 0x382   : > { %2427 = vst.msk [vmem:[%s3941_s17] sm:$0xff] %vm574_vm1, %v2419_v1  ;;  %v2398_v20 = vpop.permute.xlu0 %2397 }
 0x383   : > { %v2420_v63 = vsel %vm1541_vm4, %v727_v18, %v2398_v20 }
 0x384   : > { %2428 = vst.msk [vmem:[%s3941_s17 + $0x8] sm:$0xff] %vm574_vm1, %v2420_v63 }
 0x385   : > { %v2404_v41 = vpop.permute.xlu1 %2403 }
 0x386   : > { %v2423_v60 = vsel %vm1541_vm4, %v730_v42, %v2404_v41 }
 0x387   : > { %2431 = vst.msk [vmem:[%s3941_s17 + $0x20] sm:$0xff] %vm574_vm1, %v2423_v60  ;;  %v2406_v4 = vpop.permute.xlu0 %2405 }
 0x388   : > { %v2424_v34 = vsel %vm1541_vm4, %v731_v17, %v2406_v4 }
 0x389   : > { %2432 = vst.msk [vmem:[%s3941_s17 + $0x28] sm:$0xff] %vm574_vm1, %v2424_v34  ;;  %v2408_v29 = vpop.permute.xlu1 %2407 }
 0x38a   : > { %v2425_v12 = vsel %vm1541_vm4, %v732_v10, %v2408_v29 }
 0x38b   : > { %2433 = vst.msk [vmem:[%s3941_s17 + $0x30] sm:$0xff] %vm574_vm1, %v2425_v12  ;;  %v2410_v11 = vpop.permute.xlu0 %2409 }
 0x38c   : > { %v2426_v36 = vsel %vm1541_vm4, %v733_v31, %v2410_v11 }
 0x38d   : > { %2434 = vst.msk [vmem:[%s3941_s17 + $0x38] sm:$0xff] %vm574_vm1, %v2426_v36 }
 0x38e PF: > { %s21_s19 = sadd.s32 1, %s3189_s19   ;;  %s3995_s17 = smov %s3185_s18 }
 0x38f   : > { %p18_p5 = scmp.ge.s32.totalorder %s21_s19, 4   ;;  %s3996_s18 = smov %s3998_s20 }
 0x391   :  { %20 = sbr.rel (!%p18_p5) target bundleno = 2 (0x2), region = 97 }

</bundles_post_ra>
